<compile_context>
chip_gen: v7x
topology: tpu7x:2x2x1
jax: 0.10.0
libtpu: 0.0.40
codegen_flags: <defaults>
</compile_context>

<pallas_src>
import functools

import jax
import jax.numpy as jnp
from jax.experimental import pallas as pl
from jax.experimental.pallas import tpu as pltpu


def _cross_attn_kernel(x_ref, ctx_ref, wq_ref, wk_ref, wv_ref, wo_ref, bo_ref,
                       o_ref, *, scale, heads, dim_head):
    xq = x_ref[0]      # (tq, Dq)  bf16
    ct = ctx_ref[0]    # (M,  Dc)  bf16

    # Fused (all-heads) lane-dense projections: bf16 MXU operands, f32 acc.
    # Activations are cast back to bf16 once so every downstream matmul also
    # feeds bf16 into the MXU (softmax scale folded into q while still f32).
    q = (jnp.dot(xq, wq_ref[...], preferred_element_type=jnp.float32)
         * scale).astype(jnp.bfloat16)                                    # (tq, H*d)
    k = jnp.dot(ct, wk_ref[...],
                preferred_element_type=jnp.float32).astype(jnp.bfloat16)  # (M, H*d)
    v = jnp.dot(ct, wv_ref[...],
                preferred_element_type=jnp.float32).astype(jnp.bfloat16)  # (M, H*d)

    # One whole-K transpose (single XLU pass); per-head K then comes from cheap
    # sublane slices instead of H lane-misaligned (M, d) relayouts.
    k_t = k.T                                                             # (H*d, M)

    d = dim_head
    out_acc = jnp.zeros((xq.shape[0], wo_ref.shape[1]), jnp.float32)      # (tq, Dq)

    for h in range(heads):                 # static unroll; heads is a Python int
        qh = q[:, h * d:(h + 1) * d]       # (tq, d) bf16 (lane slice; aligned iff d==128)
        kh_t = k_t[h * d:(h + 1) * d, :]   # (d, M)  bf16 (sublane slice)
        vh = v[:, h * d:(h + 1) * d]       # (M, d)  bf16

        sim = jnp.dot(qh, kh_t, preferred_element_type=jnp.float32)       # (tq, M) f32
        # Softmax: elementwise math kept in f32 (v5e has no bf16 VPU/EUP).
        sim = sim - jnp.max(sim, axis=-1, keepdims=True)
        p = jnp.exp(sim)
        attn = p * pl.reciprocal(jnp.sum(p, axis=-1, keepdims=True), approx=True)

        oh = jnp.dot(attn.astype(jnp.bfloat16), vh,
                     preferred_element_type=jnp.float32).astype(jnp.bfloat16)  # (tq, d)
        # Fold head output straight into the output projection (sublane slice
        # of Wo) -- no concatenate, no H live head buffers.
        out_acc = out_acc + jnp.dot(oh, wo_ref[h * d:(h + 1) * d, :],
                                    preferred_element_type=jnp.float32)

    o_ref[0] = (out_acc + bo_ref[...]).astype(o_ref.dtype)


def _pick_query_tile(n):
    for cand in (512, 256, 128):
        if n % cand == 0:
            return cand
    return n


def _build_call(*, B, N, M, Dq, Dc, inner, tq, kernel, out_dtype,
                weight_mode, vmem_limit):
    def const_spec(shape):
        idx = lambda b, qt: (0,) * len(shape)
        if weight_mode is None:
            return pl.BlockSpec(shape, idx)
        return pl.BlockSpec(shape, idx, pipeline_mode=weight_mode)

    return pl.pallas_call(
        kernel,
        out_shape=jax.ShapeDtypeStruct((B, N, Dq), out_dtype),
        grid_spec=pltpu.PrefetchScalarGridSpec(
            num_scalar_prefetch=0,
            grid=(B, N // tq),
            in_specs=[
                pl.BlockSpec((1, tq, Dq), lambda b, qt: (b, qt, 0)),   # x tile
                pl.BlockSpec((1, M, Dc), lambda b, qt: (b, 0, 0)),     # context
                const_spec((Dq, inner)),                               # Wq
                const_spec((Dc, inner)),                               # Wk
                const_spec((Dc, inner)),                               # Wv
                const_spec((inner, Dq)),                               # Wo
                const_spec((1, Dq)),                                   # bias
            ],
            out_specs=pl.BlockSpec((1, tq, Dq), lambda b, qt: (b, qt, 0)),
        ),
        compiler_params=pltpu.CompilerParams(
            dimension_semantics=("parallel", "parallel"),
            vmem_limit_bytes=vmem_limit),
    )


def cross_attention(x, context, wq, wk, wv, wo, bo, *, heads, dim_head,
                    tq=None, out_dtype=None):
    B, N, Dq = x.shape
    _, M, Dc = context.shape
    inner = heads * dim_head
    scale = float(dim_head) ** -0.5
    if out_dtype is None:
        # NOTE: pass out_dtype=jnp.bfloat16 when the consumer allows -- halves
        # the double-buffered output block and HBM writeback bytes.
        out_dtype = x.dtype
    if tq is None:
        tq = _pick_query_tile(N)
    assert N % tq == 0, "query tile must divide sequence length"

    # bf16 MXU operands (f32 accumulation inside the kernel). Bias stays f32.
    x_b = x.astype(jnp.bfloat16)
    c_b = context.astype(jnp.bfloat16)
    wq_b = wq.astype(jnp.bfloat16)
    wk_b = wk.astype(jnp.bfloat16)
    wv_b = wv.astype(jnp.bfloat16)
    wo_b = wo.astype(jnp.bfloat16)
    bo_2d = bo.reshape(1, Dq).astype(jnp.float32)
    args = (x_b, c_b, wq_b, wk_b, wv_b, wo_b, bo_2d)

    kernel = functools.partial(_cross_attn_kernel, scale=scale,
                               heads=heads, dim_head=dim_head)

    # Per-generation VMEM budget (v5e/v6e: 128 MiB, v7x: 64 MiB per TC).
    try:
        vmem_cap = int(pltpu.get_tpu_info().vmem_capacity_bytes)
    except Exception:
        vmem_cap = 64 * 1024 * 1024  # conservative (v7x per-TC size)
    vmem_limit = min(100 * 1024 * 1024, (vmem_cap * 3) // 4)

    build = functools.partial(_build_call, B=B, N=N, M=M, Dq=Dq, Dc=Dc,
                              inner=inner, tq=tq, kernel=kernel,
                              out_dtype=out_dtype, vmem_limit=vmem_limit)
    try:
        # Constant-index weight/bias blocks: single-buffered.
        out = build(weight_mode=pl.Buffered(1))(*args)
        return jax.block_until_ready(out)
    except Exception:
        # TODO(synk): this jax build rejected pl.Buffered(1) single buffering;
        # fall back to default (double-buffered) weight blocks.
        return build(weight_mode=None)(*args)


def cross_attention_ref(x, context, wq, wk, wv, wo, bo, *, heads, dim_head):
    """Pure-JAX f32 reference mirroring the PyTorch forward."""
    B, N, _ = x.shape
    _, M, _ = context.shape
    scale = float(dim_head) ** -0.5
    q = x @ wq          # (B, N, H*d)
    k = context @ wk    # (B, M, H*d)
    v = context @ wv

    def split(t, L):
        return t.reshape(B, L, heads, dim_head).transpose(0, 2, 1, 3)  # (B, H, L, d)

    qh, kh, vh = split(q, N), split(k, M), split(v, M)
    sim = jnp.einsum('bhid,bhjd->bhij', qh, kh) * scale
    attn = jax.nn.softmax(sim, axis=-1)
    oh = jnp.einsum('bhij,bhjd->bhid', attn, vh)                  # (B, H, N, d)
    out = oh.transpose(0, 2, 1, 3).reshape(B, N, heads * dim_head)
    return out @ wo + bo


def _run_case(B, N, M, Dq, Dc, heads, dim_head, w_scale, tol):
    inner = heads * dim_head
    key = jax.random.PRNGKey(0)
    kx, kc, k1, k2, k3, k4, k5 = jax.random.split(key, 7)

    x = jax.random.normal(kx, (B, N, Dq), jnp.float32)
    context = jax.random.normal(kc, (B, M, Dc), jnp.float32)

    # Parameters stored in (in, out) layout (y = x @ W).
    wq = jax.random.normal(k1, (Dq, inner), jnp.float32) * w_scale
    wk = jax.random.normal(k2, (Dc, inner), jnp.float32) * w_scale
    wv = jax.random.normal(k3, (Dc, inner), jnp.float32) * w_scale
    wo = jax.random.normal(k4, (inner, Dq), jnp.float32) * w_scale
    bo = jax.random.normal(k5, (Dq,), jnp.float32) * w_scale

    out = cross_attention(x, context, wq, wk, wv, wo, bo,
                          heads=heads, dim_head=dim_head)
    out = jax.block_until_ready(out)
    ref = cross_attention_ref(x, context, wq, wk, wv, wo, bo,
                              heads=heads, dim_head=dim_head)
    # bf16 MXU operands + approx reciprocal -> relaxed but meaningful tolerance.
    assert jnp.allclose(out, ref, atol=tol, rtol=tol), (
        f"mismatch vs reference (max abs err "
        f"{float(jnp.max(jnp.abs(out - ref))):.4f})")


if __name__ == "__main__":
    # Small deterministic config (lane-subwidth dims, single query tile).
    _run_case(B=2, N=8, M=8, Dq=32, Dc=16, heads=4, dim_head=16,
              w_scale=0.1, tol=3e-2)
    # Realistic-ish cross-attention shapes: lane-misaligned head slices
    # (dim_head=64), ragged context length (M=77), and a real query-tile grid
    # axis (N=256 -> two 128-row tiles per batch).
    _run_case(B=2, N=256, M=77, Dq=320, Dc=768, heads=8, dim_head=64,
              w_scale=0.05, tol=5e-2)
    print("KERNEL_OK")
</pallas_src>

<mosaic_0001>
module attributes {stable_mosaic.version = 11 : i64} {
  func.func @_cross_attn_kernel(%arg0: i32, %arg1: i32, %arg2: memref<1x8x32xbf16, #tpu.memory_space<vmem>>, %arg3: memref<1x8x16xbf16, #tpu.memory_space<vmem>>, %arg4: memref<32x64xbf16, #tpu.memory_space<vmem>>, %arg5: memref<16x64xbf16, #tpu.memory_space<vmem>>, %arg6: memref<16x64xbf16, #tpu.memory_space<vmem>>, %arg7: memref<64x32xbf16, #tpu.memory_space<vmem>>, %arg8: memref<1x32xf32, #tpu.memory_space<vmem>>, %arg9: memref<1x8x32xf32, #tpu.memory_space<vmem>>) attributes {dimension_semantics = [#tpu.dimension_semantics<parallel>, #tpu.dimension_semantics<parallel>], iteration_bounds = array<i64: 2, 1>, scalar_prefetch = 0 : i64, scratch_operands = 0 : i64, tpu.core_type = #tpu.core_type<tc>, window_params = [{transform_indices = @transform_0, window_bounds = array<i64: 1, 8, 32>}, {transform_indices = @transform_1, window_bounds = array<i64: 1, 8, 16>}, {pipeline_mode = #tpu.pipeline_mode<synchronous>, transform_indices = @transform_2, window_bounds = array<i64: 32, 64>}, {pipeline_mode = #tpu.pipeline_mode<synchronous>, transform_indices = @transform_3, window_bounds = array<i64: 16, 64>}, {pipeline_mode = #tpu.pipeline_mode<synchronous>, transform_indices = @transform_4, window_bounds = array<i64: 16, 64>}, {pipeline_mode = #tpu.pipeline_mode<synchronous>, transform_indices = @transform_5, window_bounds = array<i64: 64, 32>}, {pipeline_mode = #tpu.pipeline_mode<synchronous>, transform_indices = @transform_6, window_bounds = array<i64: 1, 32>}, {transform_indices = @transform_7, window_bounds = array<i64: 1, 8, 32>}]} {
    %c0 = arith.constant 0 : index
    %c0_0 = arith.constant 0 : index
    %c0_1 = arith.constant 0 : index
    %0 = vector.load %arg2[%c0, %c0_0, %c0_1] : memref<1x8x32xbf16, #tpu.memory_space<vmem>>, vector<1x8x32xbf16>
    %1 = vector.shape_cast %0 : vector<1x8x32xbf16> to vector<8x32xbf16>
    %c0_2 = arith.constant 0 : index
    %c0_3 = arith.constant 0 : index
    %c0_4 = arith.constant 0 : index
    %2 = vector.load %arg3[%c0_2, %c0_3, %c0_4] : memref<1x8x16xbf16, #tpu.memory_space<vmem>>, vector<1x8x16xbf16>
    %3 = vector.shape_cast %2 : vector<1x8x16xbf16> to vector<8x16xbf16>
    %c0_5 = arith.constant 0 : index
    %c0_6 = arith.constant 0 : index
    %4 = vector.load %arg4[%c0_5, %c0_6] : memref<32x64xbf16, #tpu.memory_space<vmem>>, vector<32x64xbf16>
    %cst = arith.constant dense<0.000000e+00> : vector<8x64xf32>
    %5 = tpu.matmul %1, %4, %cst {dimension_numbers = #tpu.dot_dimension_numbers<[1], [0], [0], [1], [0, 0, 1, 1], [], []>} : vector<8x32xbf16>, vector<32x64xbf16>, vector<8x64xf32> -> vector<8x64xf32>
    %cst_7 = arith.constant 2.500000e-01 : f32
    %6 = vector.broadcast %cst_7 : f32 to vector<8x64xf32>
    %7 = arith.mulf %5, %6 : vector<8x64xf32>
    %8 = arith.truncf %7 : vector<8x64xf32> to vector<8x64xbf16>
    %c0_8 = arith.constant 0 : index
    %c0_9 = arith.constant 0 : index
    %9 = vector.load %arg5[%c0_8, %c0_9] : memref<16x64xbf16, #tpu.memory_space<vmem>>, vector<16x64xbf16>
    %cst_10 = arith.constant dense<0.000000e+00> : vector<8x64xf32>
    %10 = tpu.matmul %3, %9, %cst_10 {dimension_numbers = #tpu.dot_dimension_numbers<[1], [0], [0], [1], [0, 0, 1, 1], [], []>} : vector<8x16xbf16>, vector<16x64xbf16>, vector<8x64xf32> -> vector<8x64xf32>
    %11 = arith.truncf %10 : vector<8x64xf32> to vector<8x64xbf16>
    %c0_11 = arith.constant 0 : index
    %c0_12 = arith.constant 0 : index
    %12 = vector.load %arg6[%c0_11, %c0_12] : memref<16x64xbf16, #tpu.memory_space<vmem>>, vector<16x64xbf16>
    %cst_13 = arith.constant dense<0.000000e+00> : vector<8x64xf32>
    %13 = tpu.matmul %3, %12, %cst_13 {dimension_numbers = #tpu.dot_dimension_numbers<[1], [0], [0], [1], [0, 0, 1, 1], [], []>} : vector<8x16xbf16>, vector<16x64xbf16>, vector<8x64xf32> -> vector<8x64xf32>
    %14 = arith.truncf %13 : vector<8x64xf32> to vector<8x64xbf16>
    %15 = tpu.transpose %11, [1, 0] : vector<8x64xbf16> -> vector<64x8xbf16>
    %cst_14 = arith.constant 0.000000e+00 : f32
    %16 = vector.broadcast %cst_14 : f32 to vector<8x32xf32>
    %17 = vector.extract_strided_slice %8 {offsets = [0, 0], sizes = [8, 16], strides = [1, 1]} : vector<8x64xbf16> to vector<8x16xbf16>
    %18 = vector.extract_strided_slice %15 {offsets = [0, 0], sizes = [16, 8], strides = [1, 1]} : vector<64x8xbf16> to vector<16x8xbf16>
    %19 = vector.extract_strided_slice %14 {offsets = [0, 0], sizes = [8, 16], strides = [1, 1]} : vector<8x64xbf16> to vector<8x16xbf16>
    %cst_15 = arith.constant dense<0.000000e+00> : vector<8x8xf32>
    %20 = tpu.matmul %17, %18, %cst_15 {dimension_numbers = #tpu.dot_dimension_numbers<[1], [0], [0], [1], [0, 0, 1, 1], [], []>} : vector<8x16xbf16>, vector<16x8xbf16>, vector<8x8xf32> -> vector<8x8xf32>
    %cst_16 = arith.constant dense<0xFF800000> : vector<8xf32>
    %21 = vector.multi_reduction <maximumf>, %20, %cst_16 [1] : vector<8x8xf32> to vector<8xf32>
    %22 = vector.shape_cast %21 : vector<8xf32> to vector<8x1xf32>
    %23 = vector.broadcast %22 : vector<8x1xf32> to vector<8x8xf32>
    %24 = arith.subf %20, %23 : vector<8x8xf32>
    %25 = math.exp %24 : vector<8x8xf32>
    %cst_17 = arith.constant dense<0.000000e+00> : vector<8xf32>
    %26 = vector.multi_reduction <add>, %25, %cst_17 [1] : vector<8x8xf32> to vector<8xf32>
    %27 = vector.shape_cast %26 : vector<8xf32> to vector<8x1xf32>
    %28 = tpu.reciprocal %27 {approx = true} : vector<8x1xf32> -> vector<8x1xf32>
    %29 = vector.broadcast %28 : vector<8x1xf32> to vector<8x8xf32>
    %30 = arith.mulf %25, %29 : vector<8x8xf32>
    %31 = arith.truncf %30 : vector<8x8xf32> to vector<8x8xbf16>
    %cst_18 = arith.constant dense<0.000000e+00> : vector<8x16xf32>
    %32 = tpu.matmul %31, %19, %cst_18 {dimension_numbers = #tpu.dot_dimension_numbers<[1], [0], [0], [1], [0, 0, 1, 1], [], []>} : vector<8x8xbf16>, vector<8x16xbf16>, vector<8x16xf32> -> vector<8x16xf32>
    %33 = arith.truncf %32 : vector<8x16xf32> to vector<8x16xbf16>
    %c0_19 = arith.constant 0 : index
    %c0_20 = arith.constant 0 : index
    %34 = vector.load %arg7[%c0_19, %c0_20] : memref<64x32xbf16, #tpu.memory_space<vmem>>, vector<16x32xbf16>
    %cst_21 = arith.constant dense<0.000000e+00> : vector<8x32xf32>
    %35 = tpu.matmul %33, %34, %cst_21 {dimension_numbers = #tpu.dot_dimension_numbers<[1], [0], [0], [1], [0, 0, 1, 1], [], []>} : vector<8x16xbf16>, vector<16x32xbf16>, vector<8x32xf32> -> vector<8x32xf32>
    %36 = arith.addf %16, %35 : vector<8x32xf32>
    %37 = vector.extract_strided_slice %8 {offsets = [0, 16], sizes = [8, 16], strides = [1, 1]} : vector<8x64xbf16> to vector<8x16xbf16>
    %38 = vector.extract_strided_slice %15 {offsets = [16, 0], sizes = [16, 8], strides = [1, 1]} : vector<64x8xbf16> to vector<16x8xbf16>
    %39 = vector.extract_strided_slice %14 {offsets = [0, 16], sizes = [8, 16], strides = [1, 1]} : vector<8x64xbf16> to vector<8x16xbf16>
    %cst_22 = arith.constant dense<0.000000e+00> : vector<8x8xf32>
    %40 = tpu.matmul %37, %38, %cst_22 {dimension_numbers = #tpu.dot_dimension_numbers<[1], [0], [0], [1], [0, 0, 1, 1], [], []>} : vector<8x16xbf16>, vector<16x8xbf16>, vector<8x8xf32> -> vector<8x8xf32>
    %cst_23 = arith.constant dense<0xFF800000> : vector<8xf32>
    %41 = vector.multi_reduction <maximumf>, %40, %cst_23 [1] : vector<8x8xf32> to vector<8xf32>
    %42 = vector.shape_cast %41 : vector<8xf32> to vector<8x1xf32>
    %43 = vector.broadcast %42 : vector<8x1xf32> to vector<8x8xf32>
    %44 = arith.subf %40, %43 : vector<8x8xf32>
    %45 = math.exp %44 : vector<8x8xf32>
    %cst_24 = arith.constant dense<0.000000e+00> : vector<8xf32>
    %46 = vector.multi_reduction <add>, %45, %cst_24 [1] : vector<8x8xf32> to vector<8xf32>
    %47 = vector.shape_cast %46 : vector<8xf32> to vector<8x1xf32>
    %48 = tpu.reciprocal %47 {approx = true} : vector<8x1xf32> -> vector<8x1xf32>
    %49 = vector.broadcast %48 : vector<8x1xf32> to vector<8x8xf32>
    %50 = arith.mulf %45, %49 : vector<8x8xf32>
    %51 = arith.truncf %50 : vector<8x8xf32> to vector<8x8xbf16>
    %cst_25 = arith.constant dense<0.000000e+00> : vector<8x16xf32>
    %52 = tpu.matmul %51, %39, %cst_25 {dimension_numbers = #tpu.dot_dimension_numbers<[1], [0], [0], [1], [0, 0, 1, 1], [], []>} : vector<8x8xbf16>, vector<8x16xbf16>, vector<8x16xf32> -> vector<8x16xf32>
    %53 = arith.truncf %52 : vector<8x16xf32> to vector<8x16xbf16>
    %c16 = arith.constant 16 : index
    %c0_26 = arith.constant 0 : index
    %54 = vector.load %arg7[%c16, %c0_26] : memref<64x32xbf16, #tpu.memory_space<vmem>>, vector<16x32xbf16>
    %cst_27 = arith.constant dense<0.000000e+00> : vector<8x32xf32>
    %55 = tpu.matmul %53, %54, %cst_27 {dimension_numbers = #tpu.dot_dimension_numbers<[1], [0], [0], [1], [0, 0, 1, 1], [], []>} : vector<8x16xbf16>, vector<16x32xbf16>, vector<8x32xf32> -> vector<8x32xf32>
    %56 = arith.addf %36, %55 : vector<8x32xf32>
    %57 = vector.extract_strided_slice %8 {offsets = [0, 32], sizes = [8, 16], strides = [1, 1]} : vector<8x64xbf16> to vector<8x16xbf16>
    %58 = vector.extract_strided_slice %15 {offsets = [32, 0], sizes = [16, 8], strides = [1, 1]} : vector<64x8xbf16> to vector<16x8xbf16>
    %59 = vector.extract_strided_slice %14 {offsets = [0, 32], sizes = [8, 16], strides = [1, 1]} : vector<8x64xbf16> to vector<8x16xbf16>
    %cst_28 = arith.constant dense<0.000000e+00> : vector<8x8xf32>
    %60 = tpu.matmul %57, %58, %cst_28 {dimension_numbers = #tpu.dot_dimension_numbers<[1], [0], [0], [1], [0, 0, 1, 1], [], []>} : vector<8x16xbf16>, vector<16x8xbf16>, vector<8x8xf32> -> vector<8x8xf32>
    %cst_29 = arith.constant dense<0xFF800000> : vector<8xf32>
    %61 = vector.multi_reduction <maximumf>, %60, %cst_29 [1] : vector<8x8xf32> to vector<8xf32>
    %62 = vector.shape_cast %61 : vector<8xf32> to vector<8x1xf32>
    %63 = vector.broadcast %62 : vector<8x1xf32> to vector<8x8xf32>
    %64 = arith.subf %60, %63 : vector<8x8xf32>
    %65 = math.exp %64 : vector<8x8xf32>
    %cst_30 = arith.constant dense<0.000000e+00> : vector<8xf32>
    %66 = vector.multi_reduction <add>, %65, %cst_30 [1] : vector<8x8xf32> to vector<8xf32>
    %67 = vector.shape_cast %66 : vector<8xf32> to vector<8x1xf32>
    %68 = tpu.reciprocal %67 {approx = true} : vector<8x1xf32> -> vector<8x1xf32>
    %69 = vector.broadcast %68 : vector<8x1xf32> to vector<8x8xf32>
    %70 = arith.mulf %65, %69 : vector<8x8xf32>
    %71 = arith.truncf %70 : vector<8x8xf32> to vector<8x8xbf16>
    %cst_31 = arith.constant dense<0.000000e+00> : vector<8x16xf32>
    %72 = tpu.matmul %71, %59, %cst_31 {dimension_numbers = #tpu.dot_dimension_numbers<[1], [0], [0], [1], [0, 0, 1, 1], [], []>} : vector<8x8xbf16>, vector<8x16xbf16>, vector<8x16xf32> -> vector<8x16xf32>
    %73 = arith.truncf %72 : vector<8x16xf32> to vector<8x16xbf16>
    %c32 = arith.constant 32 : index
    %c0_32 = arith.constant 0 : index
    %74 = vector.load %arg7[%c32, %c0_32] : memref<64x32xbf16, #tpu.memory_space<vmem>>, vector<16x32xbf16>
    %cst_33 = arith.constant dense<0.000000e+00> : vector<8x32xf32>
    %75 = tpu.matmul %73, %74, %cst_33 {dimension_numbers = #tpu.dot_dimension_numbers<[1], [0], [0], [1], [0, 0, 1, 1], [], []>} : vector<8x16xbf16>, vector<16x32xbf16>, vector<8x32xf32> -> vector<8x32xf32>
    %76 = arith.addf %56, %75 : vector<8x32xf32>
    %77 = vector.extract_strided_slice %8 {offsets = [0, 48], sizes = [8, 16], strides = [1, 1]} : vector<8x64xbf16> to vector<8x16xbf16>
    %78 = vector.extract_strided_slice %15 {offsets = [48, 0], sizes = [16, 8], strides = [1, 1]} : vector<64x8xbf16> to vector<16x8xbf16>
    %79 = vector.extract_strided_slice %14 {offsets = [0, 48], sizes = [8, 16], strides = [1, 1]} : vector<8x64xbf16> to vector<8x16xbf16>
    %cst_34 = arith.constant dense<0.000000e+00> : vector<8x8xf32>
    %80 = tpu.matmul %77, %78, %cst_34 {dimension_numbers = #tpu.dot_dimension_numbers<[1], [0], [0], [1], [0, 0, 1, 1], [], []>} : vector<8x16xbf16>, vector<16x8xbf16>, vector<8x8xf32> -> vector<8x8xf32>
    %cst_35 = arith.constant dense<0xFF800000> : vector<8xf32>
    %81 = vector.multi_reduction <maximumf>, %80, %cst_35 [1] : vector<8x8xf32> to vector<8xf32>
    %82 = vector.shape_cast %81 : vector<8xf32> to vector<8x1xf32>
    %83 = vector.broadcast %82 : vector<8x1xf32> to vector<8x8xf32>
    %84 = arith.subf %80, %83 : vector<8x8xf32>
    %85 = math.exp %84 : vector<8x8xf32>
    %cst_36 = arith.constant dense<0.000000e+00> : vector<8xf32>
    %86 = vector.multi_reduction <add>, %85, %cst_36 [1] : vector<8x8xf32> to vector<8xf32>
    %87 = vector.shape_cast %86 : vector<8xf32> to vector<8x1xf32>
    %88 = tpu.reciprocal %87 {approx = true} : vector<8x1xf32> -> vector<8x1xf32>
    %89 = vector.broadcast %88 : vector<8x1xf32> to vector<8x8xf32>
    %90 = arith.mulf %85, %89 : vector<8x8xf32>
    %91 = arith.truncf %90 : vector<8x8xf32> to vector<8x8xbf16>
    %cst_37 = arith.constant dense<0.000000e+00> : vector<8x16xf32>
    %92 = tpu.matmul %91, %79, %cst_37 {dimension_numbers = #tpu.dot_dimension_numbers<[1], [0], [0], [1], [0, 0, 1, 1], [], []>} : vector<8x8xbf16>, vector<8x16xbf16>, vector<8x16xf32> -> vector<8x16xf32>
    %93 = arith.truncf %92 : vector<8x16xf32> to vector<8x16xbf16>
    %c48 = arith.constant 48 : index
    %c0_38 = arith.constant 0 : index
    %94 = vector.load %arg7[%c48, %c0_38] : memref<64x32xbf16, #tpu.memory_space<vmem>>, vector<16x32xbf16>
    %cst_39 = arith.constant dense<0.000000e+00> : vector<8x32xf32>
    %95 = tpu.matmul %93, %94, %cst_39 {dimension_numbers = #tpu.dot_dimension_numbers<[1], [0], [0], [1], [0, 0, 1, 1], [], []>} : vector<8x16xbf16>, vector<16x32xbf16>, vector<8x32xf32> -> vector<8x32xf32>
    %96 = arith.addf %76, %95 : vector<8x32xf32>
    %c0_40 = arith.constant 0 : index
    %c0_41 = arith.constant 0 : index
    %97 = vector.load %arg8[%c0_40, %c0_41] : memref<1x32xf32, #tpu.memory_space<vmem>>, vector<1x32xf32>
    %98 = vector.broadcast %97 : vector<1x32xf32> to vector<8x32xf32>
    %99 = arith.addf %96, %98 : vector<8x32xf32>
    %c0_42 = arith.constant 0 : index
    %c0_43 = arith.constant 0 : index
    %c0_44 = arith.constant 0 : index
    %100 = vector.load %arg9[%c0_42, %c0_43, %c0_44] : memref<1x8x32xf32, #tpu.memory_space<vmem>>, vector<1x8x32xf32>
    %101 = vector.shape_cast %100 : vector<1x8x32xf32> to vector<8x32xf32>
    %102 = vector.shape_cast %99 : vector<8x32xf32> to vector<1x8x32xf32>
    tpu.vector_store %arg9[%c0_42, %c0_43, %c0_44], %102 {strides = array<i32>} : memref<1x8x32xf32, #tpu.memory_space<vmem>>, vector<1x8x32xf32>,
    return
  }
  func.func @transform_0(%arg0: i32, %arg1: i32) -> (i32, i32, i32) {
    %c0_i32 = arith.constant 0 : i32
    %c0_i32_0 = arith.constant 0 : i32
    return %arg0, %arg1, %c0_i32 : i32, i32, i32
  }
  func.func @transform_1(%arg0: i32, %arg1: i32) -> (i32, i32, i32) {
    %c0_i32 = arith.constant 0 : i32
    %c0_i32_0 = arith.constant 0 : i32
    %c0_i32_1 = arith.constant 0 : i32
    return %arg0, %c0_i32, %c0_i32_0 : i32, i32, i32
  }
  func.func @transform_2(%arg0: i32, %arg1: i32) -> (i32, i32) {
    %c0_i32 = arith.constant 0 : i32
    %c0_i32_0 = arith.constant 0 : i32
    %c0_i32_1 = arith.constant 0 : i32
    return %c0_i32, %c0_i32_0 : i32, i32
  }
  func.func @transform_3(%arg0: i32, %arg1: i32) -> (i32, i32) {
    %c0_i32 = arith.constant 0 : i32
    %c0_i32_0 = arith.constant 0 : i32
    %c0_i32_1 = arith.constant 0 : i32
    return %c0_i32, %c0_i32_0 : i32, i32
  }
  func.func @transform_4(%arg0: i32, %arg1: i32) -> (i32, i32) {
    %c0_i32 = arith.constant 0 : i32
    %c0_i32_0 = arith.constant 0 : i32
    %c0_i32_1 = arith.constant 0 : i32
    return %c0_i32, %c0_i32_0 : i32, i32
  }
  func.func @transform_5(%arg0: i32, %arg1: i32) -> (i32, i32) {
    %c0_i32 = arith.constant 0 : i32
    %c0_i32_0 = arith.constant 0 : i32
    %c0_i32_1 = arith.constant 0 : i32
    return %c0_i32, %c0_i32_0 : i32, i32
  }
  func.func @transform_6(%arg0: i32, %arg1: i32) -> (i32, i32) {
    %c0_i32 = arith.constant 0 : i32
    %c0_i32_0 = arith.constant 0 : i32
    %c0_i32_1 = arith.constant 0 : i32
    return %c0_i32, %c0_i32_0 : i32, i32
  }
  func.func @transform_7(%arg0: i32, %arg1: i32) -> (i32, i32, i32) {
    %c0_i32 = arith.constant 0 : i32
    %c0_i32_0 = arith.constant 0 : i32
    return %arg0, %arg1, %c0_i32 : i32, i32, i32
  }
}

module attributes {stable_mosaic.version = 11 : i64} {
  func.func @_cross_attn_kernel(%arg0: i32, %arg1: i32, %arg2: memref<1x8x32xbf16, #tpu.memory_space<vmem>>, %arg3: memref<1x8x16xbf16, #tpu.memory_space<vmem>>, %arg4: memref<32x64xbf16, #tpu.memory_space<vmem>>, %arg5: memref<16x64xbf16, #tpu.memory_space<vmem>>, %arg6: memref<16x64xbf16, #tpu.memory_space<vmem>>, %arg7: memref<64x32xbf16, #tpu.memory_space<vmem>>, %arg8: memref<1x32xf32, #tpu.memory_space<vmem>>, %arg9: memref<1x8x32xf32, #tpu.memory_space<vmem>>) attributes {dimension_semantics = [#tpu.dimension_semantics<parallel>, #tpu.dimension_semantics<parallel>], iteration_bounds = array<i64: 2, 1>, scalar_prefetch = 0 : i64, scratch_operands = 0 : i64, tpu.core_type = #tpu.core_type<tc>, window_params = [{transform_indices = @transform_0, window_bounds = array<i64: 1, 8, 32>}, {transform_indices = @transform_1, window_bounds = array<i64: 1, 8, 16>}, {pipeline_mode = #tpu.pipeline_mode<synchronous>, transform_indices = @transform_2, window_bounds = array<i64: 32, 64>}, {pipeline_mode = #tpu.pipeline_mode<synchronous>, transform_indices = @transform_3, window_bounds = array<i64: 16, 64>}, {pipeline_mode = #tpu.pipeline_mode<synchronous>, transform_indices = @transform_4, window_bounds = array<i64: 16, 64>}, {pipeline_mode = #tpu.pipeline_mode<synchronous>, transform_indices = @transform_5, window_bounds = array<i64: 64, 32>}, {pipeline_mode = #tpu.pipeline_mode<synchronous>, transform_indices = @transform_6, window_bounds = array<i64: 1, 32>}, {transform_indices = @transform_7, window_bounds = array<i64: 1, 8, 32>}]} {
    %c0 = arith.constant 0 : index
    %c0_0 = arith.constant 0 : index
    %c0_1 = arith.constant 0 : index
    %0 = vector.load %arg2[%c0, %c0_0, %c0_1] : memref<1x8x32xbf16, #tpu.memory_space<vmem>>, vector<1x8x32xbf16>
    %1 = vector.shape_cast %0 : vector<1x8x32xbf16> to vector<8x32xbf16>
    %c0_2 = arith.constant 0 : index
    %c0_3 = arith.constant 0 : index
    %c0_4 = arith.constant 0 : index
    %2 = vector.load %arg3[%c0_2, %c0_3, %c0_4] : memref<1x8x16xbf16, #tpu.memory_space<vmem>>, vector<1x8x16xbf16>
    %3 = vector.shape_cast %2 : vector<1x8x16xbf16> to vector<8x16xbf16>
    %c0_5 = arith.constant 0 : index
    %c0_6 = arith.constant 0 : index
    %4 = vector.load %arg4[%c0_5, %c0_6] : memref<32x64xbf16, #tpu.memory_space<vmem>>, vector<32x64xbf16>
    %cst = arith.constant dense<0.000000e+00> : vector<8x64xf32>
    %5 = tpu.matmul %1, %4, %cst {dimension_numbers = #tpu.dot_dimension_numbers<[1], [0], [0], [1], [0, 0, 1, 1], [], []>} : vector<8x32xbf16>, vector<32x64xbf16>, vector<8x64xf32> -> vector<8x64xf32>
    %cst_7 = arith.constant 2.500000e-01 : f32
    %6 = vector.broadcast %cst_7 : f32 to vector<8x64xf32>
    %7 = arith.mulf %5, %6 : vector<8x64xf32>
    %8 = arith.truncf %7 : vector<8x64xf32> to vector<8x64xbf16>
    %c0_8 = arith.constant 0 : index
    %c0_9 = arith.constant 0 : index
    %9 = vector.load %arg5[%c0_8, %c0_9] : memref<16x64xbf16, #tpu.memory_space<vmem>>, vector<16x64xbf16>
    %cst_10 = arith.constant dense<0.000000e+00> : vector<8x64xf32>
    %10 = tpu.matmul %3, %9, %cst_10 {dimension_numbers = #tpu.dot_dimension_numbers<[1], [0], [0], [1], [0, 0, 1, 1], [], []>} : vector<8x16xbf16>, vector<16x64xbf16>, vector<8x64xf32> -> vector<8x64xf32>
    %11 = arith.truncf %10 : vector<8x64xf32> to vector<8x64xbf16>
    %c0_11 = arith.constant 0 : index
    %c0_12 = arith.constant 0 : index
    %12 = vector.load %arg6[%c0_11, %c0_12] : memref<16x64xbf16, #tpu.memory_space<vmem>>, vector<16x64xbf16>
    %cst_13 = arith.constant dense<0.000000e+00> : vector<8x64xf32>
    %13 = tpu.matmul %3, %12, %cst_13 {dimension_numbers = #tpu.dot_dimension_numbers<[1], [0], [0], [1], [0, 0, 1, 1], [], []>} : vector<8x16xbf16>, vector<16x64xbf16>, vector<8x64xf32> -> vector<8x64xf32>
    %14 = arith.truncf %13 : vector<8x64xf32> to vector<8x64xbf16>
    %15 = tpu.transpose %11, [1, 0] : vector<8x64xbf16> -> vector<64x8xbf16>
    %cst_14 = arith.constant 0.000000e+00 : f32
    %16 = vector.broadcast %cst_14 : f32 to vector<8x32xf32>
    %17 = vector.extract_strided_slice %8 {offsets = [0, 0], sizes = [8, 16], strides = [1, 1]} : vector<8x64xbf16> to vector<8x16xbf16>
    %18 = vector.extract_strided_slice %15 {offsets = [0, 0], sizes = [16, 8], strides = [1, 1]} : vector<64x8xbf16> to vector<16x8xbf16>
    %19 = vector.extract_strided_slice %14 {offsets = [0, 0], sizes = [8, 16], strides = [1, 1]} : vector<8x64xbf16> to vector<8x16xbf16>
    %cst_15 = arith.constant dense<0.000000e+00> : vector<8x8xf32>
    %20 = tpu.matmul %17, %18, %cst_15 {dimension_numbers = #tpu.dot_dimension_numbers<[1], [0], [0], [1], [0, 0, 1, 1], [], []>} : vector<8x16xbf16>, vector<16x8xbf16>, vector<8x8xf32> -> vector<8x8xf32>
    %cst_16 = arith.constant dense<0xFF800000> : vector<8xf32>
    %21 = vector.multi_reduction <maximumf>, %20, %cst_16 [1] : vector<8x8xf32> to vector<8xf32>
    %22 = vector.shape_cast %21 : vector<8xf32> to vector<8x1xf32>
    %23 = vector.broadcast %22 : vector<8x1xf32> to vector<8x8xf32>
    %24 = arith.subf %20, %23 : vector<8x8xf32>
    %25 = math.exp %24 : vector<8x8xf32>
    %cst_17 = arith.constant dense<0.000000e+00> : vector<8xf32>
    %26 = vector.multi_reduction <add>, %25, %cst_17 [1] : vector<8x8xf32> to vector<8xf32>
    %27 = vector.shape_cast %26 : vector<8xf32> to vector<8x1xf32>
    %28 = tpu.reciprocal %27 {approx = true} : vector<8x1xf32> -> vector<8x1xf32>
    %29 = vector.broadcast %28 : vector<8x1xf32> to vector<8x8xf32>
    %30 = arith.mulf %25, %29 : vector<8x8xf32>
    %31 = arith.truncf %30 : vector<8x8xf32> to vector<8x8xbf16>
    %cst_18 = arith.constant dense<0.000000e+00> : vector<8x16xf32>
    %32 = tpu.matmul %31, %19, %cst_18 {dimension_numbers = #tpu.dot_dimension_numbers<[1], [0], [0], [1], [0, 0, 1, 1], [], []>} : vector<8x8xbf16>, vector<8x16xbf16>, vector<8x16xf32> -> vector<8x16xf32>
    %33 = arith.truncf %32 : vector<8x16xf32> to vector<8x16xbf16>
    %c0_19 = arith.constant 0 : index
    %c0_20 = arith.constant 0 : index
    %34 = vector.load %arg7[%c0_19, %c0_20] : memref<64x32xbf16, #tpu.memory_space<vmem>>, vector<16x32xbf16>
    %cst_21 = arith.constant dense<0.000000e+00> : vector<8x32xf32>
    %35 = tpu.matmul %33, %34, %cst_21 {dimension_numbers = #tpu.dot_dimension_numbers<[1], [0], [0], [1], [0, 0, 1, 1], [], []>} : vector<8x16xbf16>, vector<16x32xbf16>, vector<8x32xf32> -> vector<8x32xf32>
    %36 = arith.addf %16, %35 : vector<8x32xf32>
    %37 = vector.extract_strided_slice %8 {offsets = [0, 16], sizes = [8, 16], strides = [1, 1]} : vector<8x64xbf16> to vector<8x16xbf16>
    %38 = vector.extract_strided_slice %15 {offsets = [16, 0], sizes = [16, 8], strides = [1, 1]} : vector<64x8xbf16> to vector<16x8xbf16>
    %39 = vector.extract_strided_slice %14 {offsets = [0, 16], sizes = [8, 16], strides = [1, 1]} : vector<8x64xbf16> to vector<8x16xbf16>
    %cst_22 = arith.constant dense<0.000000e+00> : vector<8x8xf32>
    %40 = tpu.matmul %37, %38, %cst_22 {dimension_numbers = #tpu.dot_dimension_numbers<[1], [0], [0], [1], [0, 0, 1, 1], [], []>} : vector<8x16xbf16>, vector<16x8xbf16>, vector<8x8xf32> -> vector<8x8xf32>
    %cst_23 = arith.constant dense<0xFF800000> : vector<8xf32>
    %41 = vector.multi_reduction <maximumf>, %40, %cst_23 [1] : vector<8x8xf32> to vector<8xf32>
    %42 = vector.shape_cast %41 : vector<8xf32> to vector<8x1xf32>
    %43 = vector.broadcast %42 : vector<8x1xf32> to vector<8x8xf32>
    %44 = arith.subf %40, %43 : vector<8x8xf32>
    %45 = math.exp %44 : vector<8x8xf32>
    %cst_24 = arith.constant dense<0.000000e+00> : vector<8xf32>
    %46 = vector.multi_reduction <add>, %45, %cst_24 [1] : vector<8x8xf32> to vector<8xf32>
    %47 = vector.shape_cast %46 : vector<8xf32> to vector<8x1xf32>
    %48 = tpu.reciprocal %47 {approx = true} : vector<8x1xf32> -> vector<8x1xf32>
    %49 = vector.broadcast %48 : vector<8x1xf32> to vector<8x8xf32>
    %50 = arith.mulf %45, %49 : vector<8x8xf32>
    %51 = arith.truncf %50 : vector<8x8xf32> to vector<8x8xbf16>
    %cst_25 = arith.constant dense<0.000000e+00> : vector<8x16xf32>
    %52 = tpu.matmul %51, %39, %cst_25 {dimension_numbers = #tpu.dot_dimension_numbers<[1], [0], [0], [1], [0, 0, 1, 1], [], []>} : vector<8x8xbf16>, vector<8x16xbf16>, vector<8x16xf32> -> vector<8x16xf32>
    %53 = arith.truncf %52 : vector<8x16xf32> to vector<8x16xbf16>
    %c16 = arith.constant 16 : index
    %c0_26 = arith.constant 0 : index
    %54 = vector.load %arg7[%c16, %c0_26] : memref<64x32xbf16, #tpu.memory_space<vmem>>, vector<16x32xbf16>
    %cst_27 = arith.constant dense<0.000000e+00> : vector<8x32xf32>
    %55 = tpu.matmul %53, %54, %cst_27 {dimension_numbers = #tpu.dot_dimension_numbers<[1], [0], [0], [1], [0, 0, 1, 1], [], []>} : vector<8x16xbf16>, vector<16x32xbf16>, vector<8x32xf32> -> vector<8x32xf32>
    %56 = arith.addf %36, %55 : vector<8x32xf32>
    %57 = vector.extract_strided_slice %8 {offsets = [0, 32], sizes = [8, 16], strides = [1, 1]} : vector<8x64xbf16> to vector<8x16xbf16>
    %58 = vector.extract_strided_slice %15 {offsets = [32, 0], sizes = [16, 8], strides = [1, 1]} : vector<64x8xbf16> to vector<16x8xbf16>
    %59 = vector.extract_strided_slice %14 {offsets = [0, 32], sizes = [8, 16], strides = [1, 1]} : vector<8x64xbf16> to vector<8x16xbf16>
    %cst_28 = arith.constant dense<0.000000e+00> : vector<8x8xf32>
    %60 = tpu.matmul %57, %58, %cst_28 {dimension_numbers = #tpu.dot_dimension_numbers<[1], [0], [0], [1], [0, 0, 1, 1], [], []>} : vector<8x16xbf16>, vector<16x8xbf16>, vector<8x8xf32> -> vector<8x8xf32>
    %cst_29 = arith.constant dense<0xFF800000> : vector<8xf32>
    %61 = vector.multi_reduction <maximumf>, %60, %cst_29 [1] : vector<8x8xf32> to vector<8xf32>
    %62 = vector.shape_cast %61 : vector<8xf32> to vector<8x1xf32>
    %63 = vector.broadcast %62 : vector<8x1xf32> to vector<8x8xf32>
    %64 = arith.subf %60, %63 : vector<8x8xf32>
    %65 = math.exp %64 : vector<8x8xf32>
    %cst_30 = arith.constant dense<0.000000e+00> : vector<8xf32>
    %66 = vector.multi_reduction <add>, %65, %cst_30 [1] : vector<8x8xf32> to vector<8xf32>
    %67 = vector.shape_cast %66 : vector<8xf32> to vector<8x1xf32>
    %68 = tpu.reciprocal %67 {approx = true} : vector<8x1xf32> -> vector<8x1xf32>
    %69 = vector.broadcast %68 : vector<8x1xf32> to vector<8x8xf32>
    %70 = arith.mulf %65, %69 : vector<8x8xf32>
    %71 = arith.truncf %70 : vector<8x8xf32> to vector<8x8xbf16>
    %cst_31 = arith.constant dense<0.000000e+00> : vector<8x16xf32>
    %72 = tpu.matmul %71, %59, %cst_31 {dimension_numbers = #tpu.dot_dimension_numbers<[1], [0], [0], [1], [0, 0, 1, 1], [], []>} : vector<8x8xbf16>, vector<8x16xbf16>, vector<8x16xf32> -> vector<8x16xf32>
    %73 = arith.truncf %72 : vector<8x16xf32> to vector<8x16xbf16>
    %c32 = arith.constant 32 : index
    %c0_32 = arith.constant 0 : index
    %74 = vector.load %arg7[%c32, %c0_32] : memref<64x32xbf16, #tpu.memory_space<vmem>>, vector<16x32xbf16>
    %cst_33 = arith.constant dense<0.000000e+00> : vector<8x32xf32>
    %75 = tpu.matmul %73, %74, %cst_33 {dimension_numbers = #tpu.dot_dimension_numbers<[1], [0], [0], [1], [0, 0, 1, 1], [], []>} : vector<8x16xbf16>, vector<16x32xbf16>, vector<8x32xf32> -> vector<8x32xf32>
    %76 = arith.addf %56, %75 : vector<8x32xf32>
    %77 = vector.extract_strided_slice %8 {offsets = [0, 48], sizes = [8, 16], strides = [1, 1]} : vector<8x64xbf16> to vector<8x16xbf16>
    %78 = vector.extract_strided_slice %15 {offsets = [48, 0], sizes = [16, 8], strides = [1, 1]} : vector<64x8xbf16> to vector<16x8xbf16>
    %79 = vector.extract_strided_slice %14 {offsets = [0, 48], sizes = [8, 16], strides = [1, 1]} : vector<8x64xbf16> to vector<8x16xbf16>
    %cst_34 = arith.constant dense<0.000000e+00> : vector<8x8xf32>
    %80 = tpu.matmul %77, %78, %cst_34 {dimension_numbers = #tpu.dot_dimension_numbers<[1], [0], [0], [1], [0, 0, 1, 1], [], []>} : vector<8x16xbf16>, vector<16x8xbf16>, vector<8x8xf32> -> vector<8x8xf32>
    %cst_35 = arith.constant dense<0xFF800000> : vector<8xf32>
    %81 = vector.multi_reduction <maximumf>, %80, %cst_35 [1] : vector<8x8xf32> to vector<8xf32>
    %82 = vector.shape_cast %81 : vector<8xf32> to vector<8x1xf32>
    %83 = vector.broadcast %82 : vector<8x1xf32> to vector<8x8xf32>
    %84 = arith.subf %80, %83 : vector<8x8xf32>
    %85 = math.exp %84 : vector<8x8xf32>
    %cst_36 = arith.constant dense<0.000000e+00> : vector<8xf32>
    %86 = vector.multi_reduction <add>, %85, %cst_36 [1] : vector<8x8xf32> to vector<8xf32>
    %87 = vector.shape_cast %86 : vector<8xf32> to vector<8x1xf32>
    %88 = tpu.reciprocal %87 {approx = true} : vector<8x1xf32> -> vector<8x1xf32>
    %89 = vector.broadcast %88 : vector<8x1xf32> to vector<8x8xf32>
    %90 = arith.mulf %85, %89 : vector<8x8xf32>
    %91 = arith.truncf %90 : vector<8x8xf32> to vector<8x8xbf16>
    %cst_37 = arith.constant dense<0.000000e+00> : vector<8x16xf32>
    %92 = tpu.matmul %91, %79, %cst_37 {dimension_numbers = #tpu.dot_dimension_numbers<[1], [0], [0], [1], [0, 0, 1, 1], [], []>} : vector<8x8xbf16>, vector<8x16xbf16>, vector<8x16xf32> -> vector<8x16xf32>
    %93 = arith.truncf %92 : vector<8x16xf32> to vector<8x16xbf16>
    %c48 = arith.constant 48 : index
    %c0_38 = arith.constant 0 : index
    %94 = vector.load %arg7[%c48, %c0_38] : memref<64x32xbf16, #tpu.memory_space<vmem>>, vector<16x32xbf16>
    %cst_39 = arith.constant dense<0.000000e+00> : vector<8x32xf32>
    %95 = tpu.matmul %93, %94, %cst_39 {dimension_numbers = #tpu.dot_dimension_numbers<[1], [0], [0], [1], [0, 0, 1, 1], [], []>} : vector<8x16xbf16>, vector<16x32xbf16>, vector<8x32xf32> -> vector<8x32xf32>
    %96 = arith.addf %76, %95 : vector<8x32xf32>
    %c0_40 = arith.constant 0 : index
    %c0_41 = arith.constant 0 : index
    %97 = vector.load %arg8[%c0_40, %c0_41] : memref<1x32xf32, #tpu.memory_space<vmem>>, vector<1x32xf32>
    %98 = vector.broadcast %97 : vector<1x32xf32> to vector<8x32xf32>
    %99 = arith.addf %96, %98 : vector<8x32xf32>
    %c0_42 = arith.constant 0 : index
    %c0_43 = arith.constant 0 : index
    %c0_44 = arith.constant 0 : index
    %100 = vector.load %arg9[%c0_42, %c0_43, %c0_44] : memref<1x8x32xf32, #tpu.memory_space<vmem>>, vector<1x8x32xf32>
    %101 = vector.shape_cast %100 : vector<1x8x32xf32> to vector<8x32xf32>
    %102 = vector.shape_cast %99 : vector<8x32xf32> to vector<1x8x32xf32>
    tpu.vector_store %arg9[%c0_42, %c0_43, %c0_44], %102 {strides = array<i32>} : memref<1x8x32xf32, #tpu.memory_space<vmem>>, vector<1x8x32xf32>,
    return
  }
  func.func @transform_0(%arg0: i32, %arg1: i32) -> (i32, i32, i32) {
    %c0_i32 = arith.constant 0 : i32
    %c0_i32_0 = arith.constant 0 : i32
    return %arg0, %arg1, %c0_i32 : i32, i32, i32
  }
  func.func @transform_1(%arg0: i32, %arg1: i32) -> (i32, i32, i32) {
    %c0_i32 = arith.constant 0 : i32
    %c0_i32_0 = arith.constant 0 : i32
    %c0_i32_1 = arith.constant 0 : i32
    return %arg0, %c0_i32, %c0_i32_0 : i32, i32, i32
  }
  func.func @transform_2(%arg0: i32, %arg1: i32) -> (i32, i32) {
    %c0_i32 = arith.constant 0 : i32
    %c0_i32_0 = arith.constant 0 : i32
    %c0_i32_1 = arith.constant 0 : i32
    return %c0_i32, %c0_i32_0 : i32, i32
  }
  func.func @transform_3(%arg0: i32, %arg1: i32) -> (i32, i32) {
    %c0_i32 = arith.constant 0 : i32
    %c0_i32_0 = arith.constant 0 : i32
    %c0_i32_1 = arith.constant 0 : i32
    return %c0_i32, %c0_i32_0 : i32, i32
  }
  func.func @transform_4(%arg0: i32, %arg1: i32) -> (i32, i32) {
    %c0_i32 = arith.constant 0 : i32
    %c0_i32_0 = arith.constant 0 : i32
    %c0_i32_1 = arith.constant 0 : i32
    return %c0_i32, %c0_i32_0 : i32, i32
  }
  func.func @transform_5(%arg0: i32, %arg1: i32) -> (i32, i32) {
    %c0_i32 = arith.constant 0 : i32
    %c0_i32_0 = arith.constant 0 : i32
    %c0_i32_1 = arith.constant 0 : i32
    return %c0_i32, %c0_i32_0 : i32, i32
  }
  func.func @transform_6(%arg0: i32, %arg1: i32) -> (i32, i32) {
    %c0_i32 = arith.constant 0 : i32
    %c0_i32_0 = arith.constant 0 : i32
    %c0_i32_1 = arith.constant 0 : i32
    return %c0_i32, %c0_i32_0 : i32, i32
  }
  func.func @transform_7(%arg0: i32, %arg1: i32) -> (i32, i32, i32) {
    %c0_i32 = arith.constant 0 : i32
    %c0_i32_0 = arith.constant 0 : i32
    return %arg0, %arg1, %c0_i32 : i32, i32, i32
  }
}

</mosaic_0001>

<bundles_post_ra>
// kernel: tpu_custom_call.1
= control target key start
LH: loop header
LB: loop body
LE: loop exit
PB: predicated region body
PF: predicated region fallthrough
CT: control target
= control target key end

     0   :  { %12 = vsyncpa [#allocation3], 0  ;;  %s1852_s0 = inlined_call_operand.vmem [shape: bf16[2,8,32], index: 0, kind: input, shape index: {}]   ;;  %s1853_s1 = inlined_call_operand.vmem [shape: bf16[2,8,16], index: 1, kind: input, shape index: {}]   ;;  %s1854_s2 = inlined_call_operand.vmem [shape: bf16[32,64], index: 2, kind: input, shape index: {}]   ;;  %s1855_s3 = inlined_call_operand.vmem [shape: bf16[16,64], index: 3, kind: input, shape index: {}]   ;;  %s1856_s4 = inlined_call_operand.vmem [shape: bf16[16,64], index: 4, kind: input, shape index: {}]   ;;  %s1857_s5 = inlined_call_operand.vmem [shape: bf16[64,32], index: 5, kind: input, shape index: {}]   ;;  %s1858_s6 = inlined_call_operand.vmem [shape: f32[1,32], index: 6, kind: input, shape index: {}]   ;;  %s1859_s7 = inlined_call_operand.hbm [shape: f32[2,8,32], index: 7, kind: output, shape index: {}]  }
   0x1   :  { %14 = vsyncpa [#allocation3 + $0x1], 0  ;;  %s1608_s24 = smov 0   ;;  %s1610_s25 = smov 0  }
   0x2   :  { %s1612_s26 = smov 0   ;;  %s1614_s27 = smov 0  }
   0x3   :  { %s1616_s28 = smov 0   ;;  %s1618_s29 = smov 0  }
   0x4 LB: > { %s1239_s30 = sadd.s32 4294967295, %s1560_s29   ;;  %s1240_s8 = sadd.s32 4294967294, %s1560_s29   ;;  %s1560_s29 = sphi %s1618_s29, %s20_s29   ;;  %s1556_s28 = sphi %s1616_s28, %s1866_s28   ;;  %s1552_s27 = sphi %s1614_s27, %s1865_s27   ;;  %s1548_s26 = sphi %s1612_s26, %s1864_s26   ;;  %s1544_s25 = sphi %s1610_s25, %s1863_s25   ;;  %s1540_s24 = sphi %s1608_s24, %s1862_s24  }
   0x5   : > { %s32_s9 = sadd.s32 1, %s1556_s28  ;;  %s200_s10 = sadd.s32 1, %s1548_s26 }
   0x6   : > { %p34_p0 = scmp.ge.s32.totalorder %s32_s9, 2  ;;  %p210_p1 = scmp.ne.s32.totalorder %s1548_s26, %s1544_s25 }
   0x7   : > { %p211_p2 = scmp.eq.s32.totalorder %s1239_s30, 1  ;;  %p216_p3 = scmp.ne.s32.totalorder %s1544_s25, %s1540_s24 }
   0x8   : > { %s1868_s9 = smov (%p34_p0, %s32_s9), 0  ;;  %p217_p5 = scmp.eq.s32.totalorder %s1240_s8, 1 }
   0x9   : > { %p1648_p4 = por %p211_p2, %p210_p1  ;;  %s195_s12 = ssub.s32 %s1556_s28, %s1868_s9 }
   0xa   : > { %p1243_p6 = scmp.ge.s32.totalorder %s1560_s29, 1  ;;  %p198_p7 = scmp.eq.s32.totalorder %s195_s12, 0 }
   0xb   : > { %p1655_p8 = por %p217_p5, %p216_p3  ;;  %p267_p9 = scmp.lt.s32.totalorder %s1560_s29, 3 }
   0xc   : > { %s1661_s14 = scalar_select %p198_p7, %s1548_s26, %s200_s10  }
   0xd   : > { %p268_p10 = pnand %p1243_p6, %p267_p9 }
   0xe   : > { %v1458_v0 = vld [vmem:[%s1854_s2] sm:$0xff] (!%p268_p10)   ;;  %v1562_v1 = vmov (!%p268_p10), 0.0   ;;  %vm1563_vm0 = vmmov (!%p268_p10), 0   ;;  %p305_p11 = scmp.lt.s32.totalorder (!%p268_p10), %s1552_s27, 1  ;;  %v1460_v3 = vld [vmem:[%s1854_s2 + $0x8] sm:$0xff] (!%p268_p10)   ;;  %vm389_vm1 = vcmask (!%p268_p10), 130048  }
   0xf   : > { %271 = sbr.rel (%p268_p10) target bundleno = 2622 (0xa3e), region = 48  ;;  %1306 = vmatprep.subr.bf16.mxu0 (!%p268_p10), %v1562_v1  ;;  %1314 = vmatprep.subr.bf16.mxu1 (!%p268_p10), %v1562_v1  ;;  %v1459_v2 = vld [vmem:[%s1855_s3] sm:$0xff] (!%p268_p10)   ;;  %vm335_vm2 = vcmask (!%p268_p10), 261120   ;;  %s1564_s16 = smov (!%p268_p10), 112   ;;  %vm529_vm3 = vcmask (!%p268_p10), 64512   ;;  %vm545_vm4 = vcmask (!%p268_p10), 1043456  }
  0x10   : > { %1307 = vmatpush3.bf16.msra.mxu0 (!%p268_p10), %v1458_v0  ;;  %1316 = vmatprep.mubr.msk.bf16.mxu1 (!%p268_p10), %vm1563_vm0, %v1562_v1  ;;  %v1461_v18 = vld [vmem:[%s1856_s4] sm:$0xff] (!%p268_p10)   ;;  %s1565_s19 = smov (!%p268_p10), 96   ;;  %v1463_v52 = vld [vmem:[%s1857_s5 + $0x8] sm:$0xff] (!%p268_p10)   ;;  %s1566_s30 = smov (!%p268_p10), 80  }
  0x11   : > { %1315 = vmatpush3.bf16.msra.mxu1 (!%p268_p10), %v1459_v2  ;;  %1308 = vmatprep.subr.bf16.mxu0 (!%p268_p10), %v1562_v1  ;;  %v1462_v58 = vld [vmem:[%s1857_s5] sm:$0xff] (!%p268_p10)   ;;  %s1272_s20 = sshll.u32 (!%p268_p10), %s1552_s27, 7  ;;  %s1567_s12 = smov (!%p268_p10), [#allocation2]  }
  0x12   : > { %1310 = vmatprep.mubr.msk.bf16.mxu0 (!%p268_p10), %vm1563_vm0, %v1562_v1  ;;  %1320 = vmatprep.subr.bf16.mxu1 (!%p268_p10), %v1562_v1 }
  0x14   : > { %1309 = vmatpush3.bf16.msra.mxu0 (!%p268_p10), %v1460_v3 }
  0x15   : > { %1326 = vmatprep.subr.bf16.mxu0 (!%p268_p10), %v1562_v1 }
  0x16   : > { %s306_s21 = scalar_select %p305_p11, %s1552_s27, 1 }
  0x18   : > { %s1245_s22 = sshll.u32 %s306_s21, 2 }
  0x19   : > { %s315_s8 = scalar_lea.vmem %s1853_s1, %s1245_s22  ;;  %s311_s15 = scalar_lea.vmem %s1852_s0, %s1245_s22 }
  0x1a   : > { %v318_v4 = vld [vmem:[%s315_s8] sm:$0xf]  ;;  %s1804_s8 = scalar_lea.hbm %s1859_s7, %s1272_s20 }
  0x1b   : > { %v317_v5 = vld [vmem:[%s311_s15] sm:$0xf]  ;;  %1317 = vmatmul.mubr.msk.bf16.vlgmr.msra.gmra.mrb[0].mxu1 %vm389_vm1, %v318_v4  ;;  %s1486_s15 = sshll.u32 %s1567_s12, 4  ;;  %s1487_s15 = int_to_ptr.vmem [resolvable:$false] %s1486_s15 }
  0x1c   : > { %1311 = vmatmul.mubr.msk.bf16.vlgmr.msra.gmra.mrb[0].mxu0 %vm335_vm2, %v317_v5  ;;  %1322 = vmatprep.mubr.msk.bf16.mxu1 %vm1563_vm0, %v1562_v1 }
  0x1d   : > { %1328 = vmatprep.mubr.msk.bf16.mxu0 %vm1563_vm0, %v1562_v1  ;;  %1321 = vmatpush3.bf16.msra.mxu1 %v1461_v18 }
  0x1e   : > { %1332 = vmatprep.subr.bf16.mxu1 %v1562_v1 }
  0x23   : > { %1323 = vmatmul.mubr.msk.bf16.vlgmr.msra.gmra.mrb[4].mxu1 %vm389_vm1, %v318_v4 }
  0x24   : > { %1334 = vmatprep.mubr.msk.bf16.mxu1 %vm1563_vm0, %v1562_v1 }
  0xee   : > { %v427_v6 = vpop.f32.mrb[0].mxu1 }
  0xef   : > { %v373_v7 = vpop.f32.mrb[0].mxu0  ;;  %v1695_v8 = vpack.c.bf16 %v427_v6, %v427_v6  ;;  %v1318_v9 = vpop.f32.mrb[1].mxu1 }
  0xf0   : > { %v379_v10 = vmul.f32 0.25, %v373_v7  ;;  %v1312_v11 = vpop.f32.mrb[1].mxu0  ;;  %v430_v12 = vpop.f32.mrb[2].mxu1 }
  0xf1   : > { %v376_v13 = vpop.f32.mrb[2].mxu0  ;;  %596 = vrot.lane.b32.xlu0 %v1695_v8, %s1564_s16  ;;  %v1319_v14 = vpop.f32.mrb[3].mxu1  ;;  %v487_v16 = vsel %vm389_vm1, %v1695_v8, 0 }
  0xf2   : > { %v1699_v15 = vpack.c.bf16 %v379_v10, %v379_v10  ;;  %v1313_v17 = vpop.f32.mrb[3].mxu0  ;;  %1327 = vmatpush3.bf16.xpose.msra.mxu0 %v487_v16 }
  0xf3   : > { %1338 = vmatprep.subr.bf16.mxu0 %v1562_v1 }
  0xf5   : > { %593 = vrot.lane.b32.xlu0 %v1699_v15, %s1564_s16 }
  0xf6   : > { %v476_v35 = vpop.f32.mrb[4].mxu1 }
  0xf7   : > { %v1324_v36 = vpop.f32.mrb[5].mxu1  ;;  %v1725_v41 = vpack.c.bf16 %v476_v35, %v476_v35 }
  0xf8   : > { %v479_v37 = vpop.f32.mrb[6].mxu1 }
  0xf9   : > { %1329 = vmatmul.mubr.msk.bf16.vlgmr.msra.gmra.mrb[4].mxu0 %vm389_vm1, %v1699_v15  ;;  %v1325_v38 = vpop.f32.mrb[7].mxu1  ;;  %v547_v42 = vsel %vm545_vm4, %v1725_v41, 0 }
  0xfa   : > { %1340 = vmatprep.mubr.msk.bf16.mxu0 %vm1563_vm0, %v1562_v1  ;;  %1333 = vmatpush3.bf16.msra.mxu1 %v547_v42 }
  0xfb   : > { %1344 = vmatprep.subr.bf16.mxu1 %v1562_v1 }
 0x163   : > { %v597_v19 = vpop.permute.xlu0 %596 }
 0x164   : > { %v602_v20 = vsel %vm389_vm1, %v597_v19, 0 }
 0x165   : > { %1339 = vmatpush3.bf16.xpose.msra.mxu0 %v602_v20 }
 0x166   : > { %1350 = vmatprep.subr.bf16.mxu0 %v1562_v1 }
 0x167   : > { %v594_v21 = vpop.permute.xlu0 %593 }
 0x16c   : > { %1341 = vmatmul.mubr.msk.bf16.vlgmr.msra.gmra.mrb[8].mxu0 %vm389_vm1, %v594_v21 }
 0x16d   : > { %1352 = vmatprep.mubr.msk.bf16.mxu0 %vm1563_vm0, %v1562_v1  ;;  %1351 = vmatpush3.bf16.msra.mxu0 %v1463_v52 }
 0x16e   : > { %1362 = vmatprep.subr.bf16.mxu0 %v1562_v1 }
 0x1cc   : > { %v523_v22 = vpop.f32.mrb[4].mxu0 }
 0x1cd   : > { %v1330_v23 = vpop.f32.mrb[5].mxu0  ;;  %v530_v24 = vsel %vm529_vm3, %v523_v22, -inf }
 0x1ce   : > { %531 = vmax.xlane.f32.xlu1 %v530_v24  ;;  %v526_v25 = vpop.f32.mrb[6].mxu0 }
 0x1cf   : > { %v1331_v26 = vpop.f32.mrb[7].mxu0 }
 0x23f   : > { %v638_v27 = vpop.f32.mrb[8].mxu0 }
 0x240   : > { %v1342_v28 = vpop.f32.mrb[9].mxu0  ;;  %v644_v29 = vsel %vm529_vm3, %v638_v27, -inf }
 0x241   : > { %645 = vmax.xlane.f32.xlu1 %v644_v29  ;;  %v641_v30 = vpop.f32.mrb[10].mxu0 }
 0x242   : > { %v1343_v31 = vpop.f32.mrb[11].mxu0 }
 0x25b   : > { %v532_v32 = vpop.xlane.xlu1 %531 }
 0x25c   : > { %v533_v33 = vsub.f32 %v523_v22, %v532_v32 }
 0x25e   : > { %v534_v34 = vmul.f32 1.442695, %v533_v33 }
 0x260   : > { %1466 = vpow2.f32 %v534_v34 }
 0x26a   : > { %v1467_v39 = vpop.eup %1466 }
 0x26b   : > { %v536_v40 = vsel %vm529_vm3, %v1467_v39, 0.0 }
 0x26c   : > { %537 = vadd.xlane.f32.xlu0 %v536_v40 }
 0x282   : > { %868 = vrot.lane.b32.xlu0 %v1725_v41, %s1565_s19 }
 0x2ce   : > { %v646_v43 = vpop.xlane.xlu1 %645 }
 0x2cf   : > { %v647_v44 = vsub.f32 %v638_v27, %v646_v43 }
 0x2d1   : > { %v648_v45 = vmul.f32 1.442695, %v647_v44 }
 0x2d3   : > { %1468 = vpow2.f32 %v648_v45 }
 0x2dd   : > { %v1469_v46 = vpop.eup %1468 }
 0x2de   : > { %v650_v47 = vsel %vm529_vm3, %v1469_v46, 0.0 }
 0x2df   : > { %651 = vadd.xlane.f32.xlu1 %v650_v47 }
 0x2f0   : > { %657 = vrot.lane.b32.xlu1 %v1725_v41, %s1564_s16  ;;  %s302_s16 = sand.u32 1, %s1544_s25  }
 0x2f1   : > { %s1244_s17 = sshll.u32 %s302_s16, 3  ;;  %s1142_s27 = scalar_lea.sflag [#allocation3], %s302_s16 }
 0x2f2   : > { %s304_s21 = scalar_lea.vmem [#allocation2], %s1244_s17  ;;  %s1488_s17 = scalar_lea.vmem %s1487_s15, 256 }
 0x2f3   : > { %s1156_s22 = sshll.u32 %s304_s21, 4  ;;  %s1806_s22 = int_to_ptr.vmem [resolvable:$true] %s1156_s22 }
 0x2f4   : > { %808 = vrot.lane.b32.xlu1 %v1695_v8, %s1565_s19  ;;  %s1482_s10 = scalar_lea.vmem %s1806_s22, 128  ;;  %p1489_p1 = scmp.lt.s32.totalorder %s1806_s22, %s1487_s15 }
 0x2f5   : > { %p1483_p12 = scmp.ne.s32.totalorder %s1806_s22, %s1482_s10  ;;  %p1490_p2 = scmp.lt.s32.totalorder %s1488_s17, %s1482_s10 }
 0x2f7   : > { %p1484_p13 = pnand %p1483_p12, %p1648_p4  ;;  %p1491_p3 = por %p1490_p2, %p1489_p1 }
 0x2f8   : > { %806 = vrot.lane.b32.xlu1 %v1699_v15, %s1565_s19 }
 0x2f9   : > { %v538_v48 = vpop.xlane.xlu0 %537  ;;  %p1485_p0 = pneg %p1484_p13 }
 0x2fa   : > { %1470 = vrcp.f32 %v538_v48 }
 0x2fb   : > { %p1492_p5 = pnand %p1491_p3, %p1485_p0 }
 0x2fd   : > { %v869_v60 = vpop.permute.xlu0 %868 }
 0x2fe   : > { %v874_v2 = vsel %vm545_vm4, %v869_v60, 0 }
 0x304   : > { %v1471_v49 = vpop.eup %1470 }
 0x305   : > { %v540_v50 = vmul.f32 %v1471_v49, %v1467_v39 }
 0x307   : > { %v541_v51 = vpack.c.bf16 %v540_v50, %v540_v50 }
 0x309   : > { %1335 = vmatmul.mubr.msk.bf16.vlgmr.msra.gmra.mrb[8].mxu1 %vm529_vm3, %v541_v51 }
 0x30a   : > { %1346 = vmatprep.mubr.msk.bf16.mxu1 %vm1563_vm0, %v1562_v1 }
 0x36c   : > { %v652_v53 = vpop.xlane.xlu1 %651 }
 0x36d   : > { %1472 = vrcp.f32 %v652_v53 }
 0x370   : > { %v658_v54 = vpop.permute.xlu1 %657 }
 0x371   : > { %v663_v55 = vsel %vm545_vm4, %v658_v54, 0 }
 0x372   : > { %1345 = vmatpush3.bf16.msra.mxu1 %v663_v55 }
 0x373   : > { %1356 = vmatprep.subr.bf16.mxu1 %v1562_v1 }
 0x374   : > { %v809_v4 = vpop.permute.xlu1 %808 }
 0x375   : > { %v814_v10 = vsel %vm389_vm1, %v809_v4, 0 }
 0x377   : > { %v1473_v56 = vpop.eup %1472 }
 0x378   : > { %v654_v57 = vmul.f32 %v1473_v56, %v1469_v46  ;;  %v807_v12 = vpop.permute.xlu1 %806 }
 0x37a   : > { %v655_v59 = vpack.c.bf16 %v654_v57, %v654_v57 }
 0x37c   : > { %1347 = vmatmul.mubr.msk.bf16.vlgmr.msra.gmra.mrb[12].mxu1 %vm529_vm3, %v655_v59 }
 0x37d   : > { %1357 = vmatpush3.bf16.msra.mxu1 %v1462_v58  ;;  %1358 = vmatprep.mubr.msk.bf16.mxu1 %vm1563_vm0, %v1562_v1 }
 0x37e   : > { %1368 = vmatprep.subr.bf16.mxu1 %v1562_v1 }
 0x3dc   : > { %v583_v61 = vpop.f32.mrb[8].mxu1 }
 0x3dd   : > { %v589_v62 = vpack.c.bf16 %v583_v61, %v583_v61  ;;  %v1336_v63 = vpop.f32.mrb[9].mxu1 }
 0x3de   : > { %v586_v0 = vpop.f32.mrb[10].mxu1 }
 0x3df   : > { %v1337_v3 = vpop.f32.mrb[11].mxu1  ;;  %1359 = vmatmul.mubr.msk.bf16.vlgmr.msra.gmra.mrb[16].mxu1 %vm389_vm1, %v589_v62 }
 0x3e0   : > { %1369 = vmatpush3.bf16.msra.mxu1 %v874_v2  ;;  %1370 = vmatprep.mubr.msk.bf16.mxu1 %vm1563_vm0, %v1562_v1 }
 0x3e1   : > { %1380 = vmatprep.subr.bf16.mxu1 %v1562_v1 }
 0x44f   : > { %v699_v5 = vpop.f32.mrb[12].mxu1 }
 0x450   : > { %v705_v6 = vpack.c.bf16 %v699_v5, %v699_v5  ;;  %v1348_v7 = vpop.f32.mrb[13].mxu1 }
 0x451   : > { %v702_v9 = vpop.f32.mrb[14].mxu1 }
 0x452   : > { %v1349_v11 = vpop.f32.mrb[15].mxu1  ;;  %1353 = vmatmul.mubr.msk.bf16.vlgmr.msra.gmra.mrb[12].mxu0 %vm389_vm1, %v705_v6  ;;  %v1270_v9 = vld [vmem:[%s1858_s6] ss:$0 sm:$0xff] }
 0x453   : > { %1363 = vmatpush3.bf16.xpose.msra.mxu0 %v814_v10  ;;  %1364 = vmatprep.mubr.msk.bf16.mxu0 %vm1563_vm0, %v1562_v1 }
 0x454   : > { %1374 = vmatprep.subr.bf16.mxu0 %v1562_v1 }
 0x45a   : > { %1365 = vmatmul.mubr.msk.bf16.vlgmr.msra.gmra.mrb[16].mxu0 %vm389_vm1, %v807_v12 }
 0x45b   : > { %1376 = vmatprep.mubr.msk.bf16.mxu0 %vm1563_vm0, %v1562_v1 }
 0x4b2   : > { %v800_v13 = vpop.f32.mrb[16].mxu1 }
 0x4b3   : > { %v1360_v14 = vpop.f32.mrb[17].mxu1 }
 0x4b4   : > { %v803_v16 = vpop.f32.mrb[18].mxu1 }
 0x4b5   : > { %v1361_v17 = vpop.f32.mrb[19].mxu1 }
 0x525   : > { %v751_v18 = vpop.f32.mrb[12].mxu0 }
 0x526   : > { %v801_v19 = vadd.f32 %v800_v13, %v751_v18  ;;  %v1354_v20 = vpop.f32.mrb[13].mxu0 }
 0x527   : > { %v754_v21 = vpop.f32.mrb[14].mxu0 }
 0x528   : > { %v1355_v22 = vpop.f32.mrb[15].mxu0 }
 0x52d   : > { %v850_v23 = vpop.f32.mrb[16].mxu0 }
 0x52e   : > { %v1366_v24 = vpop.f32.mrb[17].mxu0  ;;  %v856_v25 = vsel %vm529_vm3, %v850_v23, -inf }
 0x52f   : > { %857 = vmax.xlane.f32.xlu1 %v856_v25  ;;  %v853_v26 = vpop.f32.mrb[18].mxu0 }
 0x530   : > { %v1367_v27 = vpop.f32.mrb[19].mxu0 }
 0x5bc   : > { %v858_v28 = vpop.xlane.xlu1 %857 }
 0x5bd   : > { %v859_v29 = vsub.f32 %v850_v23, %v858_v28 }
 0x5bf   : > { %v860_v30 = vmul.f32 1.442695, %v859_v29 }
 0x5c1   : > { %1474 = vpow2.f32 %v860_v30 }
 0x5cb   : > { %v1475_v31 = vpop.eup %1474 }
 0x5cc   : > { %v862_v32 = vsel %vm529_vm3, %v1475_v31, 0.0 }
 0x5cd   : > { %863 = vadd.xlane.f32.xlu0 %v862_v32 }
 0x5e3   : > { %971 = vrot.lane.b32.xlu0 %v1695_v8, %s1566_s30 }
 0x5e7   : > { %969 = vrot.lane.b32.xlu0 %v1699_v15, %s1566_s30  ;;  %v1464_v15 = vld [vmem:[%s1857_s5 + $0x10] sm:$0xff]  }
 0x5e8   : > { %1375 = vmatpush3.bf16.msra.mxu0 %v1464_v15 }
 0x5e9   : > { %1386 = vmatprep.subr.bf16.mxu0 %v1562_v1 }
 0x65a   : > { %v864_v33 = vpop.xlane.xlu0 %863 }
 0x65b   : > { %1476 = vrcp.f32 %v864_v33 }
 0x65e   : > { %v972_v36 = vpop.permute.xlu0 %971 }
 0x65f   : > { %v977_v38 = vsel %vm389_vm1, %v972_v36, 0 }
 0x662   : > { %v970_v8 = vpop.permute.xlu0 %969 }
 0x665   : > { %v1477_v34 = vpop.eup %1476 }
 0x666   : > { %v866_v35 = vmul.f32 %v1477_v34, %v1475_v31 }
 0x668   : > { %v867_v37 = vpack.c.bf16 %v866_v35, %v866_v35 }
 0x66a   : > { %1371 = vmatmul.mubr.msk.bf16.vlgmr.msra.gmra.mrb[20].mxu1 %vm529_vm3, %v867_v37 }
 0x66b   : > { %1381 = vmatpush3.bf16.xpose.msra.mxu1 %v977_v38  ;;  %1382 = vmatprep.mubr.msk.bf16.mxu1 %vm1563_vm0, %v1562_v1 }
 0x66c   : > { %1392 = vmatprep.subr.bf16.mxu1 %v1562_v1 }
 0x672   : > { %1383 = vmatmul.mubr.msk.bf16.vlgmr.msra.gmra.mrb[24].mxu1 %vm389_vm1, %v970_v8 }
 0x673   : > { %1394 = vmatprep.mubr.msk.bf16.mxu1 %vm1563_vm0, %v1562_v1 }
 0x73d   : > { %v910_v39 = vpop.f32.mrb[20].mxu1 }
 0x73e   : > { %v916_v40 = vpack.c.bf16 %v910_v39, %v910_v39  ;;  %v1372_v42 = vpop.f32.mrb[21].mxu1 }
 0x73f   : > { %v913_v43 = vpop.f32.mrb[22].mxu1 }
 0x740   : > { %v1373_v44 = vpop.f32.mrb[23].mxu1  ;;  %1377 = vmatmul.mubr.msk.bf16.vlgmr.msra.gmra.mrb[20].mxu0 %vm389_vm1, %v916_v40 }
 0x741   : > { %1388 = vmatprep.mubr.msk.bf16.mxu0 %vm1563_vm0, %v1562_v1  ;;  %v1465_v1 = vld [vmem:[%s1857_s5 + $0x18] sm:$0xff]  }
 0x742   : > { %1393 = vmatpush3.bf16.msra.mxu1 %v1465_v1 }
 0x745   : > { %v1013_v45 = vpop.f32.mrb[24].mxu1 }
 0x746   : > { %v1384_v46 = vpop.f32.mrb[25].mxu1  ;;  %v1019_v47 = vsel %vm529_vm3, %v1013_v45, -inf }
 0x747   : > { %1020 = vmax.xlane.f32.xlu0 %v1019_v47  ;;  %v1016_v48 = vpop.f32.mrb[26].mxu1 }
 0x748   : > { %v1385_v49 = vpop.f32.mrb[27].mxu1 }
 0x7d4   : > { %v1021_v50 = vpop.xlane.xlu0 %1020 }
 0x7d5   : > { %v1022_v51 = vsub.f32 %v1013_v45, %v1021_v50 }
 0x7d7   : > { %v1023_v52 = vmul.f32 1.442695, %v1022_v51 }
 0x7d9   : > { %1478 = vpow2.f32 %v1023_v52 }
 0x7e3   : > { %v1479_v53 = vpop.eup %1478 }
 0x7e4   : > { %v1025_v54 = vsel %vm529_vm3, %v1479_v53, 0.0 }
 0x7e5   : > { %1026 = vadd.xlane.f32.xlu1 %v1025_v54 }
 0x7f6   : > { %1031 = vrot.lane.b32.xlu1 %v1725_v41, %s1566_s30 }
 0x813   : > { %v962_v55 = vpop.f32.mrb[20].mxu0 }
 0x814   : > { %v968_v56 = vadd.f32 %v962_v55, %v801_v19  ;;  %v1378_v57 = vpop.f32.mrb[21].mxu0 }
 0x815   : > { %v965_v58 = vpop.f32.mrb[22].mxu0 }
 0x816   : > { %v1379_v59 = vpop.f32.mrb[23].mxu0 }
 0x872   : > { %v1027_v60 = vpop.xlane.xlu1 %1026 }
 0x873   : > { %1480 = vrcp.f32 %v1027_v60 }
 0x876   : > { %v1032_v61 = vpop.permute.xlu1 %1031 }
 0x877   : > { %v1037_v62 = vsel %vm545_vm4, %v1032_v61, 0 }
 0x878   : > { %1387 = vmatpush3.bf16.msra.mxu0 %v1037_v62 }
 0x87d   : > { %v1481_v63 = vpop.eup %1480 }
 0x87e   : > { %v1029_v41 = vmul.f32 %v1481_v63, %v1479_v53 }
 0x880   : > { %v1030_v0 = vpack.c.bf16 %v1029_v41, %v1029_v41 }
 0x882   : > { %1389 = vmatmul.mubr.msk.bf16.vlgmr.msra.gmra.mrb[24].mxu0 %vm529_vm3, %v1030_v0 }
 0x955   : > { %v1073_v2 = vpop.f32.mrb[24].mxu0 }
 0x956   : > { %v1079_v3 = vpack.c.bf16 %v1073_v2, %v1073_v2  ;;  %v1390_v4 = vpop.f32.mrb[25].mxu0 }
 0x957   : > { %v1076_v5 = vpop.f32.mrb[26].mxu0 }
 0x958   : > { %v1391_v6 = vpop.f32.mrb[27].mxu0  ;;  %1395 = vmatmul.mubr.msk.bf16.vlgmr.msra.gmra.mrb[28].mxu1 %vm389_vm1, %v1079_v3 }
 0xa2b   : > { %v1125_v7 = vpop.f32.mrb[28].mxu1 }
 0xa2c   : > { %v1131_v10 = vadd.f32 %v1125_v7, %v968_v56  ;;  %v1396_v11 = vpop.f32.mrb[29].mxu1 }
 0xa2d   : > { %v1128_v12 = vpop.f32.mrb[30].mxu1 }
 0xa2e   : > { %v1139_v13 = vadd.f32 %v1270_v9, %v1131_v10  ;;  %v1397_v14 = vpop.f32.mrb[31].mxu1 }
 0xa30   : > { %1140 = vst.msk [vmem:[%s304_s21] sm:$0xff] %vm335_vm2, %v1139_v13 }
 0xa31   : > { %1495 = shalt.err (!%p1492_p5)
}
 0xa32   : > { %s1496_s16 = scalar_lea.hbm %s1804_s8, 128  ;;  %s1500_s20 = scalar_lea.hbm %s1859_s7, 256 }
 0xa33   : > { %p1497_p6 = scmp.ne.s32.totalorder %s1804_s8, %s1496_s16  ;;  %p1501_p10 = scmp.lt.u32.totalorder %s1804_s8, %s1859_s7 }
 0xa34   : > { %p1502_p11 = scmp.lt.u32.totalorder %s1500_s20, %s1496_s16  ;;  %p1504_p13 = scmp.lt.u32.totalorder %s1496_s16, %s1804_s8 }
 0xa35   : > { %p1498_p7 = pnand %p1497_p6, %p1648_p4 }
 0xa36   : > { %p1503_p12 = por %p1502_p11, %p1501_p10 }
 0xa37   : > { %p1499_p9 = pneg %p1498_p7 }
 0xa38   : > { %p1505_p0 = por %p1504_p13, %p1503_p12 }
 0xa3a   : > { %p1506_p1 = pnand %p1505_p0, %p1499_p9 }
 0xa3c   : > { %1509 = shalt.err (!%p1506_p1)
}
 0xa3d   : > { %1398 = dma.vmem_to_hbm [thread:$0]  (%p1648_p4), %s1806_s22, 128, %s1804_s8, %s1142_s27  }
 0xa3e PF: > { %p1404_p2 = scmp.ge.s32.totalorder %s1560_s29, 2  ;;  %s1168_s30 = sand.u32 1, %s1540_s24  }
 0xa3f   : > { %s1169_s10 = scalar_lea.sflag [#allocation3], %s1168_s30 }
 0xa40   : > { %p1401_p3 = pnand %p1404_p2, %p1655_p8 }
 0xa42   : > { %1535 = dma.done.wait (!%p1401_p3), %s1169_s10, 128  }
 0xa43   : > { %1537 = vsyncadd (!%p1401_p3), %s1169_s10, 4294967168  ;;  %s20_s29 = sadd.s32 1, %s1560_s29   ;;  %s1862_s24 = smov %s1544_s25 }
 0xa44   : > { %p17_p5 = scmp.ge.s32.totalorder %s20_s29, 4   ;;  %s1863_s25 = smov %s1548_s26 }
 0xa45   : > { %s1864_s26 = smov %s1661_s14  ;;  %s1865_s27 = smov %s1556_s28 }
 0xa46   : > { %s1866_s28 = smov %s1868_s9  ;;  %19 = sbr.rel (!%p17_p5) target bundleno = 4 (0x4), region = 86 }
 0xa4d   :  { %1174 = vsyncpa [#allocation3], 1 }
 0xa4e   :  { %1176 = vsyncpa [#allocation3 + $0x1], 1 }

// kernel: tpu_custom_call.1
= control target key start
LH: loop header
LB: loop body
LE: loop exit
PB: predicated region body
PF: predicated region fallthrough
CT: control target
= control target key end

     0   :  { %12 = vsyncpa [#allocation3], 0  ;;  %s1852_s0 = inlined_call_operand.vmem [shape: bf16[2,8,32], index: 0, kind: input, shape index: {}]   ;;  %s1853_s1 = inlined_call_operand.vmem [shape: bf16[2,8,16], index: 1, kind: input, shape index: {}]   ;;  %s1854_s2 = inlined_call_operand.vmem [shape: bf16[32,64], index: 2, kind: input, shape index: {}]   ;;  %s1855_s3 = inlined_call_operand.vmem [shape: bf16[16,64], index: 3, kind: input, shape index: {}]   ;;  %s1856_s4 = inlined_call_operand.vmem [shape: bf16[16,64], index: 4, kind: input, shape index: {}]   ;;  %s1857_s5 = inlined_call_operand.vmem [shape: bf16[64,32], index: 5, kind: input, shape index: {}]   ;;  %s1858_s6 = inlined_call_operand.vmem [shape: f32[1,32], index: 6, kind: input, shape index: {}]   ;;  %s1859_s7 = inlined_call_operand.hbm [shape: f32[2,8,32], index: 7, kind: output, shape index: {}]  }
   0x1   :  { %14 = vsyncpa [#allocation3 + $0x1], 0  ;;  %s1608_s24 = smov 0   ;;  %s1610_s25 = smov 0  }
   0x2   :  { %s1612_s26 = smov 0   ;;  %s1614_s27 = smov 0  }
   0x3   :  { %s1616_s28 = smov 0   ;;  %s1618_s29 = smov 0  }
   0x4 LB: > { %s1239_s30 = sadd.s32 4294967295, %s1560_s29   ;;  %s1240_s8 = sadd.s32 4294967294, %s1560_s29   ;;  %s1560_s29 = sphi %s1618_s29, %s20_s29   ;;  %s1556_s28 = sphi %s1616_s28, %s1866_s28   ;;  %s1552_s27 = sphi %s1614_s27, %s1865_s27   ;;  %s1548_s26 = sphi %s1612_s26, %s1864_s26   ;;  %s1544_s25 = sphi %s1610_s25, %s1863_s25   ;;  %s1540_s24 = sphi %s1608_s24, %s1862_s24  }
   0x5   : > { %s32_s9 = sadd.s32 1, %s1556_s28  ;;  %s200_s10 = sadd.s32 1, %s1548_s26 }
   0x6   : > { %p34_p0 = scmp.ge.s32.totalorder %s32_s9, 2  ;;  %p210_p1 = scmp.ne.s32.totalorder %s1548_s26, %s1544_s25 }
   0x7   : > { %p211_p2 = scmp.eq.s32.totalorder %s1239_s30, 1  ;;  %p216_p3 = scmp.ne.s32.totalorder %s1544_s25, %s1540_s24 }
   0x8   : > { %s1868_s9 = smov (%p34_p0, %s32_s9), 0  ;;  %p217_p5 = scmp.eq.s32.totalorder %s1240_s8, 1 }
   0x9   : > { %p1648_p4 = por %p211_p2, %p210_p1  ;;  %s195_s12 = ssub.s32 %s1556_s28, %s1868_s9 }
   0xa   : > { %p1243_p6 = scmp.ge.s32.totalorder %s1560_s29, 1  ;;  %p198_p7 = scmp.eq.s32.totalorder %s195_s12, 0 }
   0xb   : > { %p1655_p8 = por %p217_p5, %p216_p3  ;;  %p267_p9 = scmp.lt.s32.totalorder %s1560_s29, 3 }
   0xc   : > { %s1661_s14 = scalar_select %p198_p7, %s1548_s26, %s200_s10  }
   0xd   : > { %p268_p10 = pnand %p1243_p6, %p267_p9 }
   0xe   : > { %v1458_v0 = vld [vmem:[%s1854_s2] sm:$0xff] (!%p268_p10)   ;;  %v1562_v1 = vmov (!%p268_p10), 0.0   ;;  %vm1563_vm0 = vmmov (!%p268_p10), 0   ;;  %p305_p11 = scmp.lt.s32.totalorder (!%p268_p10), %s1552_s27, 1  ;;  %v1460_v3 = vld [vmem:[%s1854_s2 + $0x8] sm:$0xff] (!%p268_p10)   ;;  %vm389_vm1 = vcmask (!%p268_p10), 130048  }
   0xf   : > { %271 = sbr.rel (%p268_p10) target bundleno = 2622 (0xa3e), region = 48  ;;  %1306 = vmatprep.subr.bf16.mxu0 (!%p268_p10), %v1562_v1  ;;  %1314 = vmatprep.subr.bf16.mxu1 (!%p268_p10), %v1562_v1  ;;  %v1459_v2 = vld [vmem:[%s1855_s3] sm:$0xff] (!%p268_p10)   ;;  %vm335_vm2 = vcmask (!%p268_p10), 261120   ;;  %s1564_s16 = smov (!%p268_p10), 112   ;;  %vm529_vm3 = vcmask (!%p268_p10), 64512   ;;  %vm545_vm4 = vcmask (!%p268_p10), 1043456  }
  0x10   : > { %1307 = vmatpush3.bf16.msra.mxu0 (!%p268_p10), %v1458_v0  ;;  %1316 = vmatprep.mubr.msk.bf16.mxu1 (!%p268_p10), %vm1563_vm0, %v1562_v1  ;;  %v1461_v18 = vld [vmem:[%s1856_s4] sm:$0xff] (!%p268_p10)   ;;  %s1565_s19 = smov (!%p268_p10), 96   ;;  %v1463_v52 = vld [vmem:[%s1857_s5 + $0x8] sm:$0xff] (!%p268_p10)   ;;  %s1566_s30 = smov (!%p268_p10), 80  }
  0x11   : > { %1315 = vmatpush3.bf16.msra.mxu1 (!%p268_p10), %v1459_v2  ;;  %1308 = vmatprep.subr.bf16.mxu0 (!%p268_p10), %v1562_v1  ;;  %v1462_v58 = vld [vmem:[%s1857_s5] sm:$0xff] (!%p268_p10)   ;;  %s1272_s20 = sshll.u32 (!%p268_p10), %s1552_s27, 7  ;;  %s1567_s12 = smov (!%p268_p10), [#allocation2]  }
  0x12   : > { %1310 = vmatprep.mubr.msk.bf16.mxu0 (!%p268_p10), %vm1563_vm0, %v1562_v1  ;;  %1320 = vmatprep.subr.bf16.mxu1 (!%p268_p10), %v1562_v1 }
  0x14   : > { %1309 = vmatpush3.bf16.msra.mxu0 (!%p268_p10), %v1460_v3 }
  0x15   : > { %1326 = vmatprep.subr.bf16.mxu0 (!%p268_p10), %v1562_v1 }
  0x16   : > { %s306_s21 = scalar_select %p305_p11, %s1552_s27, 1 }
  0x18   : > { %s1245_s22 = sshll.u32 %s306_s21, 2 }
  0x19   : > { %s315_s8 = scalar_lea.vmem %s1853_s1, %s1245_s22  ;;  %s311_s15 = scalar_lea.vmem %s1852_s0, %s1245_s22 }
  0x1a   : > { %v318_v4 = vld [vmem:[%s315_s8] sm:$0xf]  ;;  %s1804_s8 = scalar_lea.hbm %s1859_s7, %s1272_s20 }
  0x1b   : > { %v317_v5 = vld [vmem:[%s311_s15] sm:$0xf]  ;;  %1317 = vmatmul.mubr.msk.bf16.vlgmr.msra.gmra.mrb[0].mxu1 %vm389_vm1, %v318_v4  ;;  %s1486_s15 = sshll.u32 %s1567_s12, 4  ;;  %s1487_s15 = int_to_ptr.vmem [resolvable:$false] %s1486_s15 }
  0x1c   : > { %1311 = vmatmul.mubr.msk.bf16.vlgmr.msra.gmra.mrb[0].mxu0 %vm335_vm2, %v317_v5  ;;  %1322 = vmatprep.mubr.msk.bf16.mxu1 %vm1563_vm0, %v1562_v1 }
  0x1d   : > { %1328 = vmatprep.mubr.msk.bf16.mxu0 %vm1563_vm0, %v1562_v1  ;;  %1321 = vmatpush3.bf16.msra.mxu1 %v1461_v18 }
  0x1e   : > { %1332 = vmatprep.subr.bf16.mxu1 %v1562_v1 }
  0x23   : > { %1323 = vmatmul.mubr.msk.bf16.vlgmr.msra.gmra.mrb[4].mxu1 %vm389_vm1, %v318_v4 }
  0x24   : > { %1334 = vmatprep.mubr.msk.bf16.mxu1 %vm1563_vm0, %v1562_v1 }
  0xee   : > { %v427_v6 = vpop.f32.mrb[0].mxu1 }
  0xef   : > { %v373_v7 = vpop.f32.mrb[0].mxu0  ;;  %v1695_v8 = vpack.c.bf16 %v427_v6, %v427_v6  ;;  %v1318_v9 = vpop.f32.mrb[1].mxu1 }
  0xf0   : > { %v379_v10 = vmul.f32 0.25, %v373_v7  ;;  %v1312_v11 = vpop.f32.mrb[1].mxu0  ;;  %v430_v12 = vpop.f32.mrb[2].mxu1 }
  0xf1   : > { %v376_v13 = vpop.f32.mrb[2].mxu0  ;;  %596 = vrot.lane.b32.xlu0 %v1695_v8, %s1564_s16  ;;  %v1319_v14 = vpop.f32.mrb[3].mxu1  ;;  %v487_v16 = vsel %vm389_vm1, %v1695_v8, 0 }
  0xf2   : > { %v1699_v15 = vpack.c.bf16 %v379_v10, %v379_v10  ;;  %v1313_v17 = vpop.f32.mrb[3].mxu0  ;;  %1327 = vmatpush3.bf16.xpose.msra.mxu0 %v487_v16 }
  0xf3   : > { %1338 = vmatprep.subr.bf16.mxu0 %v1562_v1 }
  0xf5   : > { %593 = vrot.lane.b32.xlu0 %v1699_v15, %s1564_s16 }
  0xf6   : > { %v476_v35 = vpop.f32.mrb[4].mxu1 }
  0xf7   : > { %v1324_v36 = vpop.f32.mrb[5].mxu1  ;;  %v1725_v41 = vpack.c.bf16 %v476_v35, %v476_v35 }
  0xf8   : > { %v479_v37 = vpop.f32.mrb[6].mxu1 }
  0xf9   : > { %1329 = vmatmul.mubr.msk.bf16.vlgmr.msra.gmra.mrb[4].mxu0 %vm389_vm1, %v1699_v15  ;;  %v1325_v38 = vpop.f32.mrb[7].mxu1  ;;  %v547_v42 = vsel %vm545_vm4, %v1725_v41, 0 }
  0xfa   : > { %1340 = vmatprep.mubr.msk.bf16.mxu0 %vm1563_vm0, %v1562_v1  ;;  %1333 = vmatpush3.bf16.msra.mxu1 %v547_v42 }
  0xfb   : > { %1344 = vmatprep.subr.bf16.mxu1 %v1562_v1 }
 0x163   : > { %v597_v19 = vpop.permute.xlu0 %596 }
 0x164   : > { %v602_v20 = vsel %vm389_vm1, %v597_v19, 0 }
 0x165   : > { %1339 = vmatpush3.bf16.xpose.msra.mxu0 %v602_v20 }
 0x166   : > { %1350 = vmatprep.subr.bf16.mxu0 %v1562_v1 }
 0x167   : > { %v594_v21 = vpop.permute.xlu0 %593 }
 0x16c   : > { %1341 = vmatmul.mubr.msk.bf16.vlgmr.msra.gmra.mrb[8].mxu0 %vm389_vm1, %v594_v21 }
 0x16d   : > { %1352 = vmatprep.mubr.msk.bf16.mxu0 %vm1563_vm0, %v1562_v1  ;;  %1351 = vmatpush3.bf16.msra.mxu0 %v1463_v52 }
 0x16e   : > { %1362 = vmatprep.subr.bf16.mxu0 %v1562_v1 }
 0x1cc   : > { %v523_v22 = vpop.f32.mrb[4].mxu0 }
 0x1cd   : > { %v1330_v23 = vpop.f32.mrb[5].mxu0  ;;  %v530_v24 = vsel %vm529_vm3, %v523_v22, -inf }
 0x1ce   : > { %531 = vmax.xlane.f32.xlu1 %v530_v24  ;;  %v526_v25 = vpop.f32.mrb[6].mxu0 }
 0x1cf   : > { %v1331_v26 = vpop.f32.mrb[7].mxu0 }
 0x23f   : > { %v638_v27 = vpop.f32.mrb[8].mxu0 }
 0x240   : > { %v1342_v28 = vpop.f32.mrb[9].mxu0  ;;  %v644_v29 = vsel %vm529_vm3, %v638_v27, -inf }
 0x241   : > { %645 = vmax.xlane.f32.xlu1 %v644_v29  ;;  %v641_v30 = vpop.f32.mrb[10].mxu0 }
 0x242   : > { %v1343_v31 = vpop.f32.mrb[11].mxu0 }
 0x25b   : > { %v532_v32 = vpop.xlane.xlu1 %531 }
 0x25c   : > { %v533_v33 = vsub.f32 %v523_v22, %v532_v32 }
 0x25e   : > { %v534_v34 = vmul.f32 1.442695, %v533_v33 }
 0x260   : > { %1466 = vpow2.f32 %v534_v34 }
 0x26a   : > { %v1467_v39 = vpop.eup %1466 }
 0x26b   : > { %v536_v40 = vsel %vm529_vm3, %v1467_v39, 0.0 }
 0x26c   : > { %537 = vadd.xlane.f32.xlu0 %v536_v40 }
 0x282   : > { %868 = vrot.lane.b32.xlu0 %v1725_v41, %s1565_s19 }
 0x2ce   : > { %v646_v43 = vpop.xlane.xlu1 %645 }
 0x2cf   : > { %v647_v44 = vsub.f32 %v638_v27, %v646_v43 }
 0x2d1   : > { %v648_v45 = vmul.f32 1.442695, %v647_v44 }
 0x2d3   : > { %1468 = vpow2.f32 %v648_v45 }
 0x2dd   : > { %v1469_v46 = vpop.eup %1468 }
 0x2de   : > { %v650_v47 = vsel %vm529_vm3, %v1469_v46, 0.0 }
 0x2df   : > { %651 = vadd.xlane.f32.xlu1 %v650_v47 }
 0x2f0   : > { %657 = vrot.lane.b32.xlu1 %v1725_v41, %s1564_s16  ;;  %s302_s16 = sand.u32 1, %s1544_s25  }
 0x2f1   : > { %s1244_s17 = sshll.u32 %s302_s16, 3  ;;  %s1142_s27 = scalar_lea.sflag [#allocation3], %s302_s16 }
 0x2f2   : > { %s304_s21 = scalar_lea.vmem [#allocation2], %s1244_s17  ;;  %s1488_s17 = scalar_lea.vmem %s1487_s15, 256 }
 0x2f3   : > { %s1156_s22 = sshll.u32 %s304_s21, 4  ;;  %s1806_s22 = int_to_ptr.vmem [resolvable:$true] %s1156_s22 }
 0x2f4   : > { %808 = vrot.lane.b32.xlu1 %v1695_v8, %s1565_s19  ;;  %s1482_s10 = scalar_lea.vmem %s1806_s22, 128  ;;  %p1489_p1 = scmp.lt.s32.totalorder %s1806_s22, %s1487_s15 }
 0x2f5   : > { %p1483_p12 = scmp.ne.s32.totalorder %s1806_s22, %s1482_s10  ;;  %p1490_p2 = scmp.lt.s32.totalorder %s1488_s17, %s1482_s10 }
 0x2f7   : > { %p1484_p13 = pnand %p1483_p12, %p1648_p4  ;;  %p1491_p3 = por %p1490_p2, %p1489_p1 }
 0x2f8   : > { %806 = vrot.lane.b32.xlu1 %v1699_v15, %s1565_s19 }
 0x2f9   : > { %v538_v48 = vpop.xlane.xlu0 %537  ;;  %p1485_p0 = pneg %p1484_p13 }
 0x2fa   : > { %1470 = vrcp.f32 %v538_v48 }
 0x2fb   : > { %p1492_p5 = pnand %p1491_p3, %p1485_p0 }
 0x2fd   : > { %v869_v60 = vpop.permute.xlu0 %868 }
 0x2fe   : > { %v874_v2 = vsel %vm545_vm4, %v869_v60, 0 }
 0x304   : > { %v1471_v49 = vpop.eup %1470 }
 0x305   : > { %v540_v50 = vmul.f32 %v1471_v49, %v1467_v39 }
 0x307   : > { %v541_v51 = vpack.c.bf16 %v540_v50, %v540_v50 }
 0x309   : > { %1335 = vmatmul.mubr.msk.bf16.vlgmr.msra.gmra.mrb[8].mxu1 %vm529_vm3, %v541_v51 }
 0x30a   : > { %1346 = vmatprep.mubr.msk.bf16.mxu1 %vm1563_vm0, %v1562_v1 }
 0x36c   : > { %v652_v53 = vpop.xlane.xlu1 %651 }
 0x36d   : > { %1472 = vrcp.f32 %v652_v53 }
 0x370   : > { %v658_v54 = vpop.permute.xlu1 %657 }
 0x371   : > { %v663_v55 = vsel %vm545_vm4, %v658_v54, 0 }
 0x372   : > { %1345 = vmatpush3.bf16.msra.mxu1 %v663_v55 }
 0x373   : > { %1356 = vmatprep.subr.bf16.mxu1 %v1562_v1 }
 0x374   : > { %v809_v4 = vpop.permute.xlu1 %808 }
 0x375   : > { %v814_v10 = vsel %vm389_vm1, %v809_v4, 0 }
 0x377   : > { %v1473_v56 = vpop.eup %1472 }
 0x378   : > { %v654_v57 = vmul.f32 %v1473_v56, %v1469_v46  ;;  %v807_v12 = vpop.permute.xlu1 %806 }
 0x37a   : > { %v655_v59 = vpack.c.bf16 %v654_v57, %v654_v57 }
 0x37c   : > { %1347 = vmatmul.mubr.msk.bf16.vlgmr.msra.gmra.mrb[12].mxu1 %vm529_vm3, %v655_v59 }
 0x37d   : > { %1357 = vmatpush3.bf16.msra.mxu1 %v1462_v58  ;;  %1358 = vmatprep.mubr.msk.bf16.mxu1 %vm1563_vm0, %v1562_v1 }
 0x37e   : > { %1368 = vmatprep.subr.bf16.mxu1 %v1562_v1 }
 0x3dc   : > { %v583_v61 = vpop.f32.mrb[8].mxu1 }
 0x3dd   : > { %v589_v62 = vpack.c.bf16 %v583_v61, %v583_v61  ;;  %v1336_v63 = vpop.f32.mrb[9].mxu1 }
 0x3de   : > { %v586_v0 = vpop.f32.mrb[10].mxu1 }
 0x3df   : > { %v1337_v3 = vpop.f32.mrb[11].mxu1  ;;  %1359 = vmatmul.mubr.msk.bf16.vlgmr.msra.gmra.mrb[16].mxu1 %vm389_vm1, %v589_v62 }
 0x3e0   : > { %1369 = vmatpush3.bf16.msra.mxu1 %v874_v2  ;;  %1370 = vmatprep.mubr.msk.bf16.mxu1 %vm1563_vm0, %v1562_v1 }
 0x3e1   : > { %1380 = vmatprep.subr.bf16.mxu1 %v1562_v1 }
 0x44f   : > { %v699_v5 = vpop.f32.mrb[12].mxu1 }
 0x450   : > { %v705_v6 = vpack.c.bf16 %v699_v5, %v699_v5  ;;  %v1348_v7 = vpop.f32.mrb[13].mxu1 }
 0x451   : > { %v702_v9 = vpop.f32.mrb[14].mxu1 }
 0x452   : > { %v1349_v11 = vpop.f32.mrb[15].mxu1  ;;  %1353 = vmatmul.mubr.msk.bf16.vlgmr.msra.gmra.mrb[12].mxu0 %vm389_vm1, %v705_v6  ;;  %v1270_v9 = vld [vmem:[%s1858_s6] ss:$0 sm:$0xff] }
 0x453   : > { %1363 = vmatpush3.bf16.xpose.msra.mxu0 %v814_v10  ;;  %1364 = vmatprep.mubr.msk.bf16.mxu0 %vm1563_vm0, %v1562_v1 }
 0x454   : > { %1374 = vmatprep.subr.bf16.mxu0 %v1562_v1 }
 0x45a   : > { %1365 = vmatmul.mubr.msk.bf16.vlgmr.msra.gmra.mrb[16].mxu0 %vm389_vm1, %v807_v12 }
 0x45b   : > { %1376 = vmatprep.mubr.msk.bf16.mxu0 %vm1563_vm0, %v1562_v1 }
 0x4b2   : > { %v800_v13 = vpop.f32.mrb[16].mxu1 }
 0x4b3   : > { %v1360_v14 = vpop.f32.mrb[17].mxu1 }
 0x4b4   : > { %v803_v16 = vpop.f32.mrb[18].mxu1 }
 0x4b5   : > { %v1361_v17 = vpop.f32.mrb[19].mxu1 }
 0x525   : > { %v751_v18 = vpop.f32.mrb[12].mxu0 }
 0x526   : > { %v801_v19 = vadd.f32 %v800_v13, %v751_v18  ;;  %v1354_v20 = vpop.f32.mrb[13].mxu0 }
 0x527   : > { %v754_v21 = vpop.f32.mrb[14].mxu0 }
 0x528   : > { %v1355_v22 = vpop.f32.mrb[15].mxu0 }
 0x52d   : > { %v850_v23 = vpop.f32.mrb[16].mxu0 }
 0x52e   : > { %v1366_v24 = vpop.f32.mrb[17].mxu0  ;;  %v856_v25 = vsel %vm529_vm3, %v850_v23, -inf }
 0x52f   : > { %857 = vmax.xlane.f32.xlu1 %v856_v25  ;;  %v853_v26 = vpop.f32.mrb[18].mxu0 }
 0x530   : > { %v1367_v27 = vpop.f32.mrb[19].mxu0 }
 0x5bc   : > { %v858_v28 = vpop.xlane.xlu1 %857 }
 0x5bd   : > { %v859_v29 = vsub.f32 %v850_v23, %v858_v28 }
 0x5bf   : > { %v860_v30 = vmul.f32 1.442695, %v859_v29 }
 0x5c1   : > { %1474 = vpow2.f32 %v860_v30 }
 0x5cb   : > { %v1475_v31 = vpop.eup %1474 }
 0x5cc   : > { %v862_v32 = vsel %vm529_vm3, %v1475_v31, 0.0 }
 0x5cd   : > { %863 = vadd.xlane.f32.xlu0 %v862_v32 }
 0x5e3   : > { %971 = vrot.lane.b32.xlu0 %v1695_v8, %s1566_s30 }
 0x5e7   : > { %969 = vrot.lane.b32.xlu0 %v1699_v15, %s1566_s30  ;;  %v1464_v15 = vld [vmem:[%s1857_s5 + $0x10] sm:$0xff]  }
 0x5e8   : > { %1375 = vmatpush3.bf16.msra.mxu0 %v1464_v15 }
 0x5e9   : > { %1386 = vmatprep.subr.bf16.mxu0 %v1562_v1 }
 0x65a   : > { %v864_v33 = vpop.xlane.xlu0 %863 }
 0x65b   : > { %1476 = vrcp.f32 %v864_v33 }
 0x65e   : > { %v972_v36 = vpop.permute.xlu0 %971 }
 0x65f   : > { %v977_v38 = vsel %vm389_vm1, %v972_v36, 0 }
 0x662   : > { %v970_v8 = vpop.permute.xlu0 %969 }
 0x665   : > { %v1477_v34 = vpop.eup %1476 }
 0x666   : > { %v866_v35 = vmul.f32 %v1477_v34, %v1475_v31 }
 0x668   : > { %v867_v37 = vpack.c.bf16 %v866_v35, %v866_v35 }
 0x66a   : > { %1371 = vmatmul.mubr.msk.bf16.vlgmr.msra.gmra.mrb[20].mxu1 %vm529_vm3, %v867_v37 }
 0x66b   : > { %1381 = vmatpush3.bf16.xpose.msra.mxu1 %v977_v38  ;;  %1382 = vmatprep.mubr.msk.bf16.mxu1 %vm1563_vm0, %v1562_v1 }
 0x66c   : > { %1392 = vmatprep.subr.bf16.mxu1 %v1562_v1 }
 0x672   : > { %1383 = vmatmul.mubr.msk.bf16.vlgmr.msra.gmra.mrb[24].mxu1 %vm389_vm1, %v970_v8 }
 0x673   : > { %1394 = vmatprep.mubr.msk.bf16.mxu1 %vm1563_vm0, %v1562_v1 }
 0x73d   : > { %v910_v39 = vpop.f32.mrb[20].mxu1 }
 0x73e   : > { %v916_v40 = vpack.c.bf16 %v910_v39, %v910_v39  ;;  %v1372_v42 = vpop.f32.mrb[21].mxu1 }
 0x73f   : > { %v913_v43 = vpop.f32.mrb[22].mxu1 }
 0x740   : > { %v1373_v44 = vpop.f32.mrb[23].mxu1  ;;  %1377 = vmatmul.mubr.msk.bf16.vlgmr.msra.gmra.mrb[20].mxu0 %vm389_vm1, %v916_v40 }
 0x741   : > { %1388 = vmatprep.mubr.msk.bf16.mxu0 %vm1563_vm0, %v1562_v1  ;;  %v1465_v1 = vld [vmem:[%s1857_s5 + $0x18] sm:$0xff]  }
 0x742   : > { %1393 = vmatpush3.bf16.msra.mxu1 %v1465_v1 }
 0x745   : > { %v1013_v45 = vpop.f32.mrb[24].mxu1 }
 0x746   : > { %v1384_v46 = vpop.f32.mrb[25].mxu1  ;;  %v1019_v47 = vsel %vm529_vm3, %v1013_v45, -inf }
 0x747   : > { %1020 = vmax.xlane.f32.xlu0 %v1019_v47  ;;  %v1016_v48 = vpop.f32.mrb[26].mxu1 }
 0x748   : > { %v1385_v49 = vpop.f32.mrb[27].mxu1 }
 0x7d4   : > { %v1021_v50 = vpop.xlane.xlu0 %1020 }
 0x7d5   : > { %v1022_v51 = vsub.f32 %v1013_v45, %v1021_v50 }
 0x7d7   : > { %v1023_v52 = vmul.f32 1.442695, %v1022_v51 }
 0x7d9   : > { %1478 = vpow2.f32 %v1023_v52 }
 0x7e3   : > { %v1479_v53 = vpop.eup %1478 }
 0x7e4   : > { %v1025_v54 = vsel %vm529_vm3, %v1479_v53, 0.0 }
 0x7e5   : > { %1026 = vadd.xlane.f32.xlu1 %v1025_v54 }
 0x7f6   : > { %1031 = vrot.lane.b32.xlu1 %v1725_v41, %s1566_s30 }
 0x813   : > { %v962_v55 = vpop.f32.mrb[20].mxu0 }
 0x814   : > { %v968_v56 = vadd.f32 %v962_v55, %v801_v19  ;;  %v1378_v57 = vpop.f32.mrb[21].mxu0 }
 0x815   : > { %v965_v58 = vpop.f32.mrb[22].mxu0 }
 0x816   : > { %v1379_v59 = vpop.f32.mrb[23].mxu0 }
 0x872   : > { %v1027_v60 = vpop.xlane.xlu1 %1026 }
 0x873   : > { %1480 = vrcp.f32 %v1027_v60 }
 0x876   : > { %v1032_v61 = vpop.permute.xlu1 %1031 }
 0x877   : > { %v1037_v62 = vsel %vm545_vm4, %v1032_v61, 0 }
 0x878   : > { %1387 = vmatpush3.bf16.msra.mxu0 %v1037_v62 }
 0x87d   : > { %v1481_v63 = vpop.eup %1480 }
 0x87e   : > { %v1029_v41 = vmul.f32 %v1481_v63, %v1479_v53 }
 0x880   : > { %v1030_v0 = vpack.c.bf16 %v1029_v41, %v1029_v41 }
 0x882   : > { %1389 = vmatmul.mubr.msk.bf16.vlgmr.msra.gmra.mrb[24].mxu0 %vm529_vm3, %v1030_v0 }
 0x955   : > { %v1073_v2 = vpop.f32.mrb[24].mxu0 }
 0x956   : > { %v1079_v3 = vpack.c.bf16 %v1073_v2, %v1073_v2  ;;  %v1390_v4 = vpop.f32.mrb[25].mxu0 }
 0x957   : > { %v1076_v5 = vpop.f32.mrb[26].mxu0 }
 0x958   : > { %v1391_v6 = vpop.f32.mrb[27].mxu0  ;;  %1395 = vmatmul.mubr.msk.bf16.vlgmr.msra.gmra.mrb[28].mxu1 %vm389_vm1, %v1079_v3 }
 0xa2b   : > { %v1125_v7 = vpop.f32.mrb[28].mxu1 }
 0xa2c   : > { %v1131_v10 = vadd.f32 %v1125_v7, %v968_v56  ;;  %v1396_v11 = vpop.f32.mrb[29].mxu1 }
 0xa2d   : > { %v1128_v12 = vpop.f32.mrb[30].mxu1 }
 0xa2e   : > { %v1139_v13 = vadd.f32 %v1270_v9, %v1131_v10  ;;  %v1397_v14 = vpop.f32.mrb[31].mxu1 }
 0xa30   : > { %1140 = vst.msk [vmem:[%s304_s21] sm:$0xff] %vm335_vm2, %v1139_v13 }
 0xa31   : > { %1495 = shalt.err (!%p1492_p5)
}
 0xa32   : > { %s1496_s16 = scalar_lea.hbm %s1804_s8, 128  ;;  %s1500_s20 = scalar_lea.hbm %s1859_s7, 256 }
 0xa33   : > { %p1497_p6 = scmp.ne.s32.totalorder %s1804_s8, %s1496_s16  ;;  %p1501_p10 = scmp.lt.u32.totalorder %s1804_s8, %s1859_s7 }
 0xa34   : > { %p1502_p11 = scmp.lt.u32.totalorder %s1500_s20, %s1496_s16  ;;  %p1504_p13 = scmp.lt.u32.totalorder %s1496_s16, %s1804_s8 }
 0xa35   : > { %p1498_p7 = pnand %p1497_p6, %p1648_p4 }
 0xa36   : > { %p1503_p12 = por %p1502_p11, %p1501_p10 }
 0xa37   : > { %p1499_p9 = pneg %p1498_p7 }
 0xa38   : > { %p1505_p0 = por %p1504_p13, %p1503_p12 }
 0xa3a   : > { %p1506_p1 = pnand %p1505_p0, %p1499_p9 }
 0xa3c   : > { %1509 = shalt.err (!%p1506_p1)
}
 0xa3d   : > { %1398 = dma.vmem_to_hbm [thread:$0]  (%p1648_p4), %s1806_s22, 128, %s1804_s8, %s1142_s27  }
 0xa3e PF: > { %p1404_p2 = scmp.ge.s32.totalorder %s1560_s29, 2  ;;  %s1168_s30 = sand.u32 1, %s1540_s24  }
 0xa3f   : > { %s1169_s10 = scalar_lea.sflag [#allocation3], %s1168_s30 }
 0xa40   : > { %p1401_p3 = pnand %p1404_p2, %p1655_p8 }
 0xa42   : > { %1535 = dma.done.wait (!%p1401_p3), %s1169_s10, 128  }
 0xa43   : > { %1537 = vsyncadd (!%p1401_p3), %s1169_s10, 4294967168  ;;  %s20_s29 = sadd.s32 1, %s1560_s29   ;;  %s1862_s24 = smov %s1544_s25 }
 0xa44   : > { %p17_p5 = scmp.ge.s32.totalorder %s20_s29, 4   ;;  %s1863_s25 = smov %s1548_s26 }
 0xa45   : > { %s1864_s26 = smov %s1661_s14  ;;  %s1865_s27 = smov %s1556_s28 }
 0xa46   : > { %s1866_s28 = smov %s1868_s9  ;;  %19 = sbr.rel (!%p17_p5) target bundleno = 4 (0x4), region = 86 }
 0xa4d   :  { %1174 = vsyncpa [#allocation3], 1 }
 0xa4e   :  { %1176 = vsyncpa [#allocation3 + $0x1], 1 }

</bundles_post_ra>
